<compile_context>
chip_gen: v7x
topology: tpu7x:2x2x1
jax: 0.10.0
libtpu: 0.0.40
codegen_flags: <defaults>
</compile_context>

<pallas_src>
import functools

import jax
import jax.numpy as jnp
import numpy as np
from jax import lax
from jax.experimental import pallas as pl
from jax.experimental.pallas import tpu as pltpu


KC = 64  # conv1 contraction: 4 phases x 9 taps = 36 real columns, zero-padded


def _round_up(x, m):
    return ((x + m - 1) // m) * m


def _vmem_budget_bytes():
    """Generation-aware scoped-VMEM budget (v7x has 64 MiB physical)."""
    try:
        cap = int(pltpu.get_tpu_info().vmem_capacity_bytes)
    except Exception:
        cap = 128 * 1024 * 1024
    return max(32 * 1024 * 1024, min(cap // 2, 96 * 1024 * 1024))


def _pick_time_tile(T2, F2, Cpad, vmem_budget):
    """Largest tTp1 (conv2 output time rows per grid step, incl. one discard
    row) whose per-step working set fits the budget; never much larger than
    what T2 needs."""
    F2c = F2 + 1

    def est(c):
        R = F2c * c + 16
        m2 = F2 * c
        return (2 * R * KC * 2                          # P block, double-buffered bf16
                + R * 4 * Cpad * 6                      # y1 f32 + bf16
                + m2 * Cpad * 12                        # conv2 acc f32 + y2 + relayouts
                + (KC * 4 * Cpad + 9 * Cpad * Cpad + F2 * Cpad * Cpad) * 2
                + 10 * Cpad * 4                         # biases
                + 2 * c * Cpad * 4)                     # out f32, double-buffered

    cands = (16, 32, 64, 128)
    cap = next((c for c in cands if c >= T2 + 1), cands[-1])
    fit = [c for c in cands if est(c) <= vmem_budget]
    return min(cap, max(fit) if fit else cands[0])


# ----------------------------------------------------------------------------
# Fused kernel: conv1(1->C,3x3,s2)+ReLU -> conv2(C->C,3x3,s2)+ReLU -> Linear.
# One grid step = one (batch, time-tile).  y1/y2 live only in VMEM.
# ----------------------------------------------------------------------------
def _fused_subsample_kernel(p_ref, w1_ref, b1_ref, w2_ref, b2_ref, wl_ref,
                            bl_ref, o_ref, *, F2, tTp1, Cpad, M2):
    C = Cpad
    # conv1 (K zero-padded to KC) + bias + ReLU.  The four polyphase phases
    # come out side-by-side in lanes: y1[:, p*C + c] = y1_poly[p, r, c].
    y1 = jnp.dot(p_ref[...], w1_ref[...], preferred_element_type=jnp.float32)
    y1 = jnp.maximum(y1 + b1_ref[...], 0.0).astype(jnp.bfloat16)      # (R, 4C)

    # conv2: the nine 3x3/stride-2 taps grouped by row offset so each group is
    # one wide-K MXU matmul.  Rows are (f-major, time-minor); the bias
    # initializes the accumulator (no separate add pass).
    # TODO(synk): the two offsets at +1 (time halo) need a 1-row VMEM relayout;
    # pre-shifted time phases would remove it at the cost of ~1.5x P size.
    acc = jnp.broadcast_to(b2_ref[...], (M2, C)).astype(jnp.float32)
    groups = ((0, 0, 4 * C),            # taps ki in {0,1}, kj in {0,1}
              (1, 0, 2 * C),            # taps ki = 2,      kj in {0,1}
              (tTp1, 0, C),             # tap  ki = 0,      kj = 2
              (tTp1, 2 * C, C),         # tap  ki = 1,      kj = 2
              (tTp1 + 1, 0, C))         # tap  ki = 2,      kj = 2
    wrow = 0
    for off, lane, k in groups:
        acc = acc + jnp.dot(y1[off:off + M2, lane:lane + k],
                            w2_ref[wrow:wrow + k, :],
                            preferred_element_type=jnp.float32)
        wrow += k
    y2 = jnp.maximum(acc, 0.0).astype(jnp.bfloat16)                   # (M2, C)

    # linear over (f, c): per-f slices are contiguous, 16-aligned row blocks.
    out = jnp.broadcast_to(bl_ref[...], (tTp1, C)).astype(jnp.float32)
    for h in range(F2):
        out = out + jnp.dot(y2[h * tTp1:(h + 1) * tTp1, :],
                            wl_ref[h * C:(h + 1) * C, :],
                            preferred_element_type=jnp.float32)
    o_ref[...] = out.astype(o_ref.dtype)


# ----------------------------------------------------------------------------
# Plain-JAX glue: conv1 im2col patches written DIRECTLY in the kernel layout.
# P is only 9 taps wide, so this rearrangement is ~14x cheaper than touching y1.
# ----------------------------------------------------------------------------
def _build_conv1_patches(xb, *, F2, tT, nT, tTp1, R):
    """P[b*nT+ti, hh*tTp1+gg, (pt*2+pf)*9 + ki*3+kj]
         = x[b, 4*(ti*tT+gg) + 2*pt + ki, 4*hh + 2*pf + kj].
    Positions outside the valid conv range hold arbitrary finite values (they
    are never read by valid outputs); rows >= (F2+1)*tTp1 / lanes >= 36 are 0.
    """
    B, T, idim = xb.shape
    F2c = F2 + 1
    Tneed = 4 * nT * tT + 5
    Fneed = 4 * F2 + 5
    xpad = jnp.pad(xb, ((0, 0), (0, max(0, Tneed - T)),
                        (0, max(0, Fneed - idim))))
    tg = np.arange(nT)[:, None] * tT + np.arange(tTp1)[None, :]   # (nT, tTp1)
    hh = np.arange(F2c)
    cols = []
    for pt in range(2):
        for pf in range(2):
            for ki in range(3):
                for kj in range(3):
                    tau = 4 * tg + 2 * pt + ki                     # (nT, tTp1)
                    phi = 4 * hh + 2 * pf + kj                     # (F2c,)
                    cols.append(xpad[:, tau, :][..., phi])  # (B, nT, tTp1, F2c)
    P = jnp.stack(cols, axis=-1)                           # (B, nT, tTp1, F2c, 36)
    P = jnp.transpose(P, (0, 1, 3, 2, 4))                  # f-major, time-minor
    P = P.reshape(B * nT, F2c * tTp1, 36)
    return jnp.pad(P, ((0, 0), (0, R - F2c * tTp1), (0, KC - 36)))


# ----------------------------------------------------------------------------
# Forward pass matching Conv2dSubsampling.forward
# ----------------------------------------------------------------------------
def conv2d_subsampling_forward(params, x, x_mask):
    """x: (B, T, idim) f32, x_mask: (B, 1, T) bool (or None)."""
    B, T, idim = x.shape
    odim, Cpad, F2 = params["odim"], params["Cpad"], params["F2"]
    T1 = (T - 3) // 2 + 1
    T2 = (T1 - 3) // 2 + 1
    F2c = F2 + 1

    vmem_limit = _vmem_budget_bytes()
    tTp1 = _pick_time_tile(T2, F2, Cpad, vmem_limit)
    tT = tTp1 - 1
    nT = -(-T2 // tT)
    R = F2c * tTp1 + 16
    M2 = F2 * tTp1

    xb = x.astype(jnp.bfloat16)
    P = _build_conv1_patches(xb, F2=F2, tT=tT, nT=nT, tTp1=tTp1, R=R)

    kernel = functools.partial(_fused_subsample_kernel, F2=F2, tTp1=tTp1,
                               Cpad=Cpad, M2=M2)
    flops = 2 * B * nT * (R * KC * 4 * Cpad + M2 * 9 * Cpad * Cpad
                          + tTp1 * F2 * Cpad * Cpad)
    bytes_accessed = (P.size * 2
                      + (KC * 4 * Cpad + 9 * Cpad * Cpad + F2 * Cpad * Cpad) * 2
                      + 6 * Cpad * 4
                      + B * nT * tTp1 * Cpad * 4)

    out = pl.pallas_call(
        kernel,
        out_shape=jax.ShapeDtypeStruct((B * nT, tTp1, Cpad), jnp.float32),
        grid=(B * nT,),
        in_specs=[
            pl.BlockSpec((None, R, KC), lambda i: (i, 0, 0)),
            pl.BlockSpec((KC, 4 * Cpad), lambda i: (0, 0)),      # resident
            pl.BlockSpec((1, 4 * Cpad), lambda i: (0, 0)),       # resident
            pl.BlockSpec((9 * Cpad, Cpad), lambda i: (0, 0)),    # resident
            pl.BlockSpec((1, Cpad), lambda i: (0, 0)),           # resident
            pl.BlockSpec((F2 * Cpad, Cpad), lambda i: (0, 0)),   # resident
            pl.BlockSpec((1, Cpad), lambda i: (0, 0)),           # resident
        ],
        out_specs=pl.BlockSpec((None, tTp1, Cpad), lambda i: (i, 0, 0)),
        compiler_params=pltpu.CompilerParams(
            dimension_semantics=("parallel",),
            vmem_limit_bytes=vmem_limit),
        cost_estimate=pl.CostEstimate(flops=flops, transcendentals=0,
                                      bytes_accessed=bytes_accessed),
    )(P, params["w1w"], params["b1w"], params["w2g"], params["b2p"],
      params["wl"], params["blp"])

    out = out.reshape(B, nT, tTp1, Cpad)[:, :, :tT, :]
    out = out.reshape(B, nT * tT, Cpad)[:, :T2, :odim]

    if x_mask is None:
        return out, None
    return out, x_mask[:, :, :-2:2][:, :, :-2:2]


# ----------------------------------------------------------------------------
# Pure-JAX reference (correctness only), bf16-quantized to match the kernel's
# bf16-operand / f32-accumulate numerics.
# ----------------------------------------------------------------------------
def reference_forward(params, x, x_mask):
    q = lambda a: a.astype(jnp.bfloat16).astype(jnp.float32)
    dn = ("NCHW", "OIHW", "NCHW")
    hi = lax.Precision.HIGHEST
    xi = q(x)[:, None, :, :]
    y1 = lax.conv_general_dilated(xi, q(params["w1_raw"]), (2, 2), "VALID",
                                  dimension_numbers=dn, precision=hi)
    y1 = jnp.maximum(y1 + params["b1_raw"].reshape(1, -1, 1, 1), 0.0)
    y2 = lax.conv_general_dilated(q(y1), q(params["w2_raw"]), (2, 2), "VALID",
                                  dimension_numbers=dn, precision=hi)
    y2 = jnp.maximum(y2 + params["b2_raw"].reshape(1, -1, 1, 1), 0.0)
    b, c, t, f = y2.shape
    feat = jnp.transpose(y2, (0, 2, 1, 3)).reshape(b, t, c * f)
    out = jnp.dot(q(feat), q(params["wl_raw"]).T, precision=hi) + params["bl_raw"]
    mask = None if x_mask is None else x_mask[:, :, :-2:2][:, :, :-2:2]
    return out, mask


# ----------------------------------------------------------------------------
# Parameter init: raw PyTorch-shaped weights plus kernel-shaped weights that
# are padded / permuted / grouped / cast ONCE.
# ----------------------------------------------------------------------------
def init_params(key, idim, odim):
    F1 = (idim - 3) // 2 + 1
    F2 = (F1 - 3) // 2 + 1
    Cpad = _round_up(odim, 128)

    k1, k2, k3, k4, k5, k6 = jax.random.split(key, 6)
    w1_raw = jax.random.normal(k1, (odim, 1, 3, 3), jnp.float32) * 0.2
    b1 = jax.random.normal(k2, (odim,), jnp.float32) * 0.1
    w2_raw = jax.random.normal(k3, (odim, odim, 3, 3), jnp.float32) * 0.1
    b2 = jax.random.normal(k4, (odim,), jnp.float32) * 0.1
    wl_raw = jax.random.normal(k5, (odim, odim * F2), jnp.float32) * 0.1
    bl = jax.random.normal(k6, (odim,), jnp.float32) * 0.1

    # conv1: block-diagonal wide weight, one copy of the 9-tap weight per phase.
    w1_taps = jnp.pad(w1_raw.reshape(odim, 9).T, ((0, 0), (0, Cpad - odim)))
    w1w = jnp.zeros((KC, 4 * Cpad), jnp.float32)
    for p in range(4):
        w1w = w1w.at[p * 9:(p + 1) * 9, p * Cpad:(p + 1) * Cpad].set(w1_taps)
    b1w = jnp.tile(jnp.pad(b1, (0, Cpad - odim)), 4).reshape(1, 4 * Cpad)

    # conv2: per-tap (Cin, Cout) weights stacked in the kernel's group order.
    def tap(ki, kj):
        return jnp.pad(w2_raw[:, :, ki, kj].T,
                       ((0, Cpad - odim), (0, Cpad - odim)))
    order = [(0, 0), (0, 1), (1, 0), (1, 1),   # group 0 (offset 0, phases 0..3)
             (2, 0), (2, 1),                   # group 1 (offset 1, phases 0,1)
             (0, 2),                           # group 2a (offset tTp1, phase 0)
             (1, 2),                           # group 2b (offset tTp1, phase 2)
             (2, 2)]                           # group 3 (offset tTp1+1, phase 0)
    w2g = jnp.concatenate([tap(ki, kj) for ki, kj in order], axis=0)
    b2p = jnp.pad(b2, (0, Cpad - odim)).reshape(1, Cpad)

    # linear: fold the (c, f) -> (f, c) activation transpose into the weight.
    wl_t = jnp.transpose(wl_raw.reshape(odim, odim, F2), (2, 1, 0))  # [f, c, n]
    wl = jnp.pad(wl_t, ((0, 0), (0, Cpad - odim), (0, Cpad - odim))
                 ).reshape(F2 * Cpad, Cpad)
    blp = jnp.pad(bl, (0, Cpad - odim)).reshape(1, Cpad)

    return {
        "odim": odim, "F1": F1, "F2": F2, "Cpad": Cpad,
        # raw weights (reference only)
        "w1_raw": w1_raw, "b1_raw": b1, "w2_raw": w2_raw, "b2_raw": b2,
        "wl_raw": wl_raw, "bl_raw": bl,
        # fused-kernel weights (bf16 matmul operands, f32 biases)
        "w1w": w1w.astype(jnp.bfloat16), "b1w": b1w.astype(jnp.float32),
        "w2g": w2g.astype(jnp.bfloat16), "b2p": b2p.astype(jnp.float32),
        "wl": wl.astype(jnp.bfloat16), "blp": blp.astype(jnp.float32),
    }


if __name__ == "__main__":
    B, T, idim, odim = 2, 16, 16, 8

    key = jax.random.PRNGKey(0)
    kp, kx = jax.random.split(key)
    params = init_params(kp, idim, odim)

    x = jax.random.normal(kx, (B, T, idim), jnp.float32)
    x_mask = jnp.ones((B, 1, T), dtype=bool)

    fwd = jax.jit(functools.partial(conv2d_subsampling_forward, params))
    out, mask = fwd(x, x_mask)
    out = jax.block_until_ready(out)
    mask = jax.block_until_ready(mask)

    # Correctness check against a pure-JAX (lax.conv) reference.
    ref_out, ref_mask = reference_forward(params, x, x_mask)
    np.testing.assert_allclose(np.asarray(out), np.asarray(ref_out),
                               rtol=2e-2, atol=2e-2)
    assert np.array_equal(np.asarray(mask), np.asarray(ref_mask))
    assert out.shape == (B, ((T - 1) // 2 - 1) // 2, odim)

    print("KERNEL_OK")
</pallas_src>

<mosaic_0001>
module attributes {stable_mosaic.version = 11 : i64} {
  func.func @_fused_subsample_kernel(%arg0: i32, %arg1: memref<1x80x64xbf16, #tpu.memory_space<vmem>>, %arg2: memref<64x512xbf16, #tpu.memory_space<vmem>>, %arg3: memref<1x512xf32, #tpu.memory_space<vmem>>, %arg4: memref<1152x128xbf16, #tpu.memory_space<vmem>>, %arg5: memref<1x128xf32, #tpu.memory_space<vmem>>, %arg6: memref<384x128xbf16, #tpu.memory_space<vmem>>, %arg7: memref<1x128xf32, #tpu.memory_space<vmem>>, %arg8: memref<1x16x128xf32, #tpu.memory_space<vmem>>) attributes {dimension_semantics = [#tpu.dimension_semantics<parallel>], iteration_bounds = array<i64: 2>, scalar_prefetch = 0 : i64, scratch_operands = 0 : i64, tpu.core_type = #tpu.core_type<tc>, window_params = [{transform_indices = @transform_0, window_bounds = array<i64: 1, 80, 64>}, {pipeline_mode = #tpu.pipeline_mode<synchronous>, transform_indices = @transform_1, window_bounds = array<i64: 64, 512>}, {pipeline_mode = #tpu.pipeline_mode<synchronous>, transform_indices = @transform_2, window_bounds = array<i64: 1, 512>}, {pipeline_mode = #tpu.pipeline_mode<synchronous>, transform_indices = @transform_3, window_bounds = array<i64: 1152, 128>}, {pipeline_mode = #tpu.pipeline_mode<synchronous>, transform_indices = @transform_4, window_bounds = array<i64: 1, 128>}, {pipeline_mode = #tpu.pipeline_mode<synchronous>, transform_indices = @transform_5, window_bounds = array<i64: 384, 128>}, {pipeline_mode = #tpu.pipeline_mode<synchronous>, transform_indices = @transform_6, window_bounds = array<i64: 1, 128>}, {transform_indices = @transform_7, window_bounds = array<i64: 1, 16, 128>}]} {
    %c0 = arith.constant 0 : index
    %c0_0 = arith.constant 0 : index
    %c0_1 = arith.constant 0 : index
    %0 = vector.load %arg1[%c0, %c0_0, %c0_1] : memref<1x80x64xbf16, #tpu.memory_space<vmem>>, vector<1x80x64xbf16>
    %1 = vector.shape_cast %0 : vector<1x80x64xbf16> to vector<80x64xbf16>
    %c0_2 = arith.constant 0 : index
    %c0_3 = arith.constant 0 : index
    %2 = vector.load %arg2[%c0_2, %c0_3] : memref<64x512xbf16, #tpu.memory_space<vmem>>, vector<64x512xbf16>
    %cst = arith.constant dense<0.000000e+00> : vector<80x512xf32>
    %3 = tpu.matmul %1, %2, %cst {dimension_numbers = #tpu.dot_dimension_numbers<[1], [0], [0], [1], [0, 0, 1, 1], [], []>} : vector<80x64xbf16>, vector<64x512xbf16>, vector<80x512xf32> -> vector<80x512xf32>
    %c0_4 = arith.constant 0 : index
    %c0_5 = arith.constant 0 : index
    %4 = vector.load %arg3[%c0_4, %c0_5] : memref<1x512xf32, #tpu.memory_space<vmem>>, vector<1x512xf32>
    %5 = vector.broadcast %4 : vector<1x512xf32> to vector<80x512xf32>
    %6 = arith.addf %3, %5 : vector<80x512xf32>
    %cst_6 = arith.constant 0.000000e+00 : f32
    %7 = vector.broadcast %cst_6 : f32 to vector<80x512xf32>
    %8 = arith.maximumf %6, %7 : vector<80x512xf32>
    %9 = arith.truncf %8 : vector<80x512xf32> to vector<80x512xbf16>
    %c0_7 = arith.constant 0 : index
    %c0_8 = arith.constant 0 : index
    %10 = vector.load %arg5[%c0_7, %c0_8] : memref<1x128xf32, #tpu.memory_space<vmem>>, vector<1x128xf32>
    %11 = vector.shape_cast %10 : vector<1x128xf32> to vector<1x128xf32>
    %12 = vector.broadcast %11 : vector<1x128xf32> to vector<48x128xf32>
    %13 = vector.extract_strided_slice %9 {offsets = [0, 0], sizes = [48, 512], strides = [1, 1]} : vector<80x512xbf16> to vector<48x512xbf16>
    %c0_9 = arith.constant 0 : index
    %c0_10 = arith.constant 0 : index
    %14 = vector.load %arg4[%c0_9, %c0_10] : memref<1152x128xbf16, #tpu.memory_space<vmem>>, vector<512x128xbf16>
    %cst_11 = arith.constant dense<0.000000e+00> : vector<48x128xf32>
    %15 = tpu.matmul %13, %14, %cst_11 {dimension_numbers = #tpu.dot_dimension_numbers<[1], [0], [0], [1], [0, 0, 1, 1], [], []>} : vector<48x512xbf16>, vector<512x128xbf16>, vector<48x128xf32> -> vector<48x128xf32>
    %16 = arith.addf %12, %15 : vector<48x128xf32>
    %17 = vector.extract_strided_slice %9 {offsets = [1, 0], sizes = [48, 256], strides = [1, 1]} : vector<80x512xbf16> to vector<48x256xbf16>
    %c512 = arith.constant 512 : index
    %c0_12 = arith.constant 0 : index
    %18 = vector.load %arg4[%c512, %c0_12] : memref<1152x128xbf16, #tpu.memory_space<vmem>>, vector<256x128xbf16>
    %cst_13 = arith.constant dense<0.000000e+00> : vector<48x128xf32>
    %19 = tpu.matmul %17, %18, %cst_13 {dimension_numbers = #tpu.dot_dimension_numbers<[1], [0], [0], [1], [0, 0, 1, 1], [], []>} : vector<48x256xbf16>, vector<256x128xbf16>, vector<48x128xf32> -> vector<48x128xf32>
    %20 = arith.addf %16, %19 : vector<48x128xf32>
    %21 = vector.extract_strided_slice %9 {offsets = [16, 0], sizes = [48, 128], strides = [1, 1]} : vector<80x512xbf16> to vector<48x128xbf16>
    %c768 = arith.constant 768 : index
    %c0_14 = arith.constant 0 : index
    %22 = vector.load %arg4[%c768, %c0_14] : memref<1152x128xbf16, #tpu.memory_space<vmem>>, vector<128x128xbf16>
    %cst_15 = arith.constant dense<0.000000e+00> : vector<48x128xf32>
    %23 = tpu.matmul %21, %22, %cst_15 {dimension_numbers = #tpu.dot_dimension_numbers<[1], [0], [0], [1], [0, 0, 1, 1], [], []>} : vector<48x128xbf16>, vector<128x128xbf16>, vector<48x128xf32> -> vector<48x128xf32>
    %24 = arith.addf %20, %23 : vector<48x128xf32>
    %25 = vector.extract_strided_slice %9 {offsets = [16, 256], sizes = [48, 128], strides = [1, 1]} : vector<80x512xbf16> to vector<48x128xbf16>
    %c896 = arith.constant 896 : index
    %c0_16 = arith.constant 0 : index
    %26 = vector.load %arg4[%c896, %c0_16] : memref<1152x128xbf16, #tpu.memory_space<vmem>>, vector<128x128xbf16>
    %cst_17 = arith.constant dense<0.000000e+00> : vector<48x128xf32>
    %27 = tpu.matmul %25, %26, %cst_17 {dimension_numbers = #tpu.dot_dimension_numbers<[1], [0], [0], [1], [0, 0, 1, 1], [], []>} : vector<48x128xbf16>, vector<128x128xbf16>, vector<48x128xf32> -> vector<48x128xf32>
    %28 = arith.addf %24, %27 : vector<48x128xf32>
    %29 = vector.extract_strided_slice %9 {offsets = [17, 0], sizes = [48, 128], strides = [1, 1]} : vector<80x512xbf16> to vector<48x128xbf16>
    %c1024 = arith.constant 1024 : index
    %c0_18 = arith.constant 0 : index
    %30 = vector.load %arg4[%c1024, %c0_18] : memref<1152x128xbf16, #tpu.memory_space<vmem>>, vector<128x128xbf16>
    %cst_19 = arith.constant dense<0.000000e+00> : vector<48x128xf32>
    %31 = tpu.matmul %29, %30, %cst_19 {dimension_numbers = #tpu.dot_dimension_numbers<[1], [0], [0], [1], [0, 0, 1, 1], [], []>} : vector<48x128xbf16>, vector<128x128xbf16>, vector<48x128xf32> -> vector<48x128xf32>
    %32 = arith.addf %28, %31 : vector<48x128xf32>
    %cst_20 = arith.constant 0.000000e+00 : f32
    %33 = vector.broadcast %cst_20 : f32 to vector<48x128xf32>
    %34 = arith.maximumf %32, %33 : vector<48x128xf32>
    %35 = arith.truncf %34 : vector<48x128xf32> to vector<48x128xbf16>
    %c0_21 = arith.constant 0 : index
    %c0_22 = arith.constant 0 : index
    %36 = vector.load %arg7[%c0_21, %c0_22] : memref<1x128xf32, #tpu.memory_space<vmem>>, vector<1x128xf32>
    %37 = vector.shape_cast %36 : vector<1x128xf32> to vector<1x128xf32>
    %38 = vector.broadcast %37 : vector<1x128xf32> to vector<16x128xf32>
    %39 = vector.extract_strided_slice %35 {offsets = [0, 0], sizes = [16, 128], strides = [1, 1]} : vector<48x128xbf16> to vector<16x128xbf16>
    %c0_23 = arith.constant 0 : index
    %c0_24 = arith.constant 0 : index
    %40 = vector.load %arg6[%c0_23, %c0_24] : memref<384x128xbf16, #tpu.memory_space<vmem>>, vector<128x128xbf16>
    %cst_25 = arith.constant dense<0.000000e+00> : vector<16x128xf32>
    %41 = tpu.matmul %39, %40, %cst_25 {dimension_numbers = #tpu.dot_dimension_numbers<[1], [0], [0], [1], [0, 0, 1, 1], [], []>} : vector<16x128xbf16>, vector<128x128xbf16>, vector<16x128xf32> -> vector<16x128xf32>
    %42 = arith.addf %38, %41 : vector<16x128xf32>
    %43 = vector.extract_strided_slice %35 {offsets = [16, 0], sizes = [16, 128], strides = [1, 1]} : vector<48x128xbf16> to vector<16x128xbf16>
    %c128 = arith.constant 128 : index
    %c0_26 = arith.constant 0 : index
    %44 = vector.load %arg6[%c128, %c0_26] : memref<384x128xbf16, #tpu.memory_space<vmem>>, vector<128x128xbf16>
    %cst_27 = arith.constant dense<0.000000e+00> : vector<16x128xf32>
    %45 = tpu.matmul %43, %44, %cst_27 {dimension_numbers = #tpu.dot_dimension_numbers<[1], [0], [0], [1], [0, 0, 1, 1], [], []>} : vector<16x128xbf16>, vector<128x128xbf16>, vector<16x128xf32> -> vector<16x128xf32>
    %46 = arith.addf %42, %45 : vector<16x128xf32>
    %47 = vector.extract_strided_slice %35 {offsets = [32, 0], sizes = [16, 128], strides = [1, 1]} : vector<48x128xbf16> to vector<16x128xbf16>
    %c256 = arith.constant 256 : index
    %c0_28 = arith.constant 0 : index
    %48 = vector.load %arg6[%c256, %c0_28] : memref<384x128xbf16, #tpu.memory_space<vmem>>, vector<128x128xbf16>
    %cst_29 = arith.constant dense<0.000000e+00> : vector<16x128xf32>
    %49 = tpu.matmul %47, %48, %cst_29 {dimension_numbers = #tpu.dot_dimension_numbers<[1], [0], [0], [1], [0, 0, 1, 1], [], []>} : vector<16x128xbf16>, vector<128x128xbf16>, vector<16x128xf32> -> vector<16x128xf32>
    %50 = arith.addf %46, %49 : vector<16x128xf32>
    %c0_30 = arith.constant 0 : index
    %c0_31 = arith.constant 0 : index
    %c0_32 = arith.constant 0 : index
    %51 = vector.load %arg8[%c0_30, %c0_31, %c0_32] : memref<1x16x128xf32, #tpu.memory_space<vmem>>, vector<1x16x128xf32>
    %52 = vector.shape_cast %51 : vector<1x16x128xf32> to vector<16x128xf32>
    %53 = vector.shape_cast %50 : vector<16x128xf32> to vector<1x16x128xf32>
    tpu.vector_store %arg8[%c0_30, %c0_31, %c0_32], %53 {strides = array<i32>} : memref<1x16x128xf32, #tpu.memory_space<vmem>>, vector<1x16x128xf32>,
    return
  }
  func.func @transform_0(%arg0: i32) -> (i32, i32, i32) {
    %c0_i32 = arith.constant 0 : i32
    %c0_i32_0 = arith.constant 0 : i32
    %c0_i32_1 = arith.constant 0 : i32
    return %arg0, %c0_i32, %c0_i32_0 : i32, i32, i32
  }
  func.func @transform_1(%arg0: i32) -> (i32, i32) {
    %c0_i32 = arith.constant 0 : i32
    %c0_i32_0 = arith.constant 0 : i32
    %c0_i32_1 = arith.constant 0 : i32
    return %c0_i32, %c0_i32_0 : i32, i32
  }
  func.func @transform_2(%arg0: i32) -> (i32, i32) {
    %c0_i32 = arith.constant 0 : i32
    %c0_i32_0 = arith.constant 0 : i32
    %c0_i32_1 = arith.constant 0 : i32
    return %c0_i32, %c0_i32_0 : i32, i32
  }
  func.func @transform_3(%arg0: i32) -> (i32, i32) {
    %c0_i32 = arith.constant 0 : i32
    %c0_i32_0 = arith.constant 0 : i32
    %c0_i32_1 = arith.constant 0 : i32
    return %c0_i32, %c0_i32_0 : i32, i32
  }
  func.func @transform_4(%arg0: i32) -> (i32, i32) {
    %c0_i32 = arith.constant 0 : i32
    %c0_i32_0 = arith.constant 0 : i32
    %c0_i32_1 = arith.constant 0 : i32
    return %c0_i32, %c0_i32_0 : i32, i32
  }
  func.func @transform_5(%arg0: i32) -> (i32, i32) {
    %c0_i32 = arith.constant 0 : i32
    %c0_i32_0 = arith.constant 0 : i32
    %c0_i32_1 = arith.constant 0 : i32
    return %c0_i32, %c0_i32_0 : i32, i32
  }
  func.func @transform_6(%arg0: i32) -> (i32, i32) {
    %c0_i32 = arith.constant 0 : i32
    %c0_i32_0 = arith.constant 0 : i32
    %c0_i32_1 = arith.constant 0 : i32
    return %c0_i32, %c0_i32_0 : i32, i32
  }
  func.func @transform_7(%arg0: i32) -> (i32, i32, i32) {
    %c0_i32 = arith.constant 0 : i32
    %c0_i32_0 = arith.constant 0 : i32
    %c0_i32_1 = arith.constant 0 : i32
    return %arg0, %c0_i32, %c0_i32_0 : i32, i32, i32
  }
}

</mosaic_0001>

<bundles_post_ra>
// kernel: conv2d_subsampling_forward.1
= control target key start
LH: loop header
LB: loop body
LE: loop exit
PB: predicated region body
PF: predicated region fallthrough
CT: control target
= control target key end

     0   :  { %s3867_s0 = inlined_call_operand.hbm [shape: bf16[2,80,64], index: 0, kind: input, shape index: {}]   ;;  %s3868_s1 = inlined_call_operand.hbm [shape: bf16[64,512], index: 1, kind: input, shape index: {}]   ;;  %s3869_s2 = inlined_call_operand.hbm [shape: f32[1,512], index: 2, kind: input, shape index: {}]   ;;  %s3870_s3 = inlined_call_operand.hbm [shape: bf16[1152,128], index: 3, kind: input, shape index: {}]   ;;  %s3871_s4 = inlined_call_operand.hbm [shape: f32[1,128], index: 4, kind: input, shape index: {}]   ;;  %s3872_s5 = inlined_call_operand.hbm [shape: bf16[384,128], index: 5, kind: input, shape index: {}]   ;;  %s3873_s6 = inlined_call_operand.hbm [shape: f32[1,128], index: 6, kind: input, shape index: {}]   ;;  %s3874_s7 = inlined_call_operand.hbm [shape: f32[2,16,128], index: 7, kind: output, shape index: {}]  }
   0x1   :  { %3880 = sst [smem:[#allocation20_spill]] %s3868_s1 }
   0x2   :  { %12 = vsyncpa [#allocation3], 0 }
   0x3   :  { %14 = vsyncpa [#allocation3 + $0x1], 0 }
   0x4   :  { %15 = vsyncpa [#allocation6], 0 }
   0x5   :  { %16 = vsyncpa [#allocation9], 0 }
   0x6   :  { %17 = vsyncpa [#allocation12], 0 }
   0x7   :  { %18 = vsyncpa [#allocation4], 0 }
   0x8   :  { %20 = vsyncpa [#allocation4 + $0x1], 0  ;;  %s3342_s24 = smov 0   ;;  %s3344_s25 = smov 0  }
   0x9   :  { %s3346_s26 = smov 0   ;;  %s3348_s27 = smov 0  }
   0xa LB: > { %s3285_s28 = smov [#allocation5]   ;;  %s3363_s30 = sadd.s32 4294967295, %s3283_s27   ;;  %s3283_s27 = sphi %s3348_s27, %s3905_s27   ;;  %s3279_s26 = sphi %s3346_s26, %s3904_s26   ;;  %s3275_s25 = sphi %s3344_s25, %s3903_s25   ;;  %s3271_s24 = sphi %s3342_s24, %s3902_s24  }
   0xb   : > { %s221_s29 = sshll.u32 %s3285_s28, 4  ;;  %p2265_p0 = scmp.ge.s32.totalorder %s3283_s27, 1  ;;  %s3368_s29 = int_to_ptr.vmem [resolvable:$true] %s221_s29 }
   0xc   : > { %p3875_p1 = scmp.eq.s32.totalorder %s3363_s30, 0  ;;  %p209_p2 = scmp.lt.s32.totalorder %s3283_s27, 3 }
   0xd   : > { %s3286_s9 = smov [#allocation8]   ;;  %s3287_s12 = smov [#allocation11]  }
   0xe   : > { %p3370_p3 = pnand %p2265_p0, %p209_p2  ;;  %s245_s10 = sshll.u32 %s3286_s9, 4  ;;  %s3383_s10 = int_to_ptr.vmem [resolvable:$true] %s245_s10 }
   0xf   : > { %s3385_s13 = sshll.u32 %s3287_s12, 4  ;;  %s3883_s1 = sld [smem:[#allocation20_spill]]  ;;  %s270_s13 = int_to_ptr.vmem [resolvable:$true] %s3385_s13 }
  0x10   : > { %s3881_s8 = scalar_select %p3370_p3, 1, 0 }
  0x11   : > { %p2794_p5 = pneg %p3370_p3 }
  0x13   : > { %p3379_p6 = pnand %p2794_p5, %p3875_p1 }
  0x15   : > { %s3007_s16 = scalar_lea.hbm %s3883_s1, 2048  ;;  %p3395_p8 = pneg %p3379_p6 }
  0x16   : > { %p3008_p7 = scmp.ne.s32.totalorder %s3883_s1, %s3007_s16  ;;  %p3014_p11 = scmp.lt.u32.totalorder %s3007_s16, %s3883_s1 }
  0x18   : > { %p3010_p9 = pnand %p3395_p8, %p3008_p7 }
  0x1a   : > { %p3011_p10 = pneg %p3010_p9 }
  0x1c   : > { %p3016_p12 = pnand %p3014_p11, %p3011_p10 }
  0x1e   : > { %3019 = shalt.err (!%p3016_p12)
}
  0x1f   : > { %s3020_s22 = scalar_lea.vmem %s3368_s29, 2048  ;;  %p3028_p5 = scmp.lt.s32.totalorder %s3368_s29, %s3368_s29 }
  0x20   : > { %p3021_p13 = scmp.ne.s32.totalorder %s3368_s29, %s3020_s22  ;;  %p3029_p4 = scmp.lt.s32.totalorder %s3020_s22, %s3020_s22 }
  0x22   : > { %p3023_p0 = pnand %p3021_p13, %p3395_p8  ;;  %p3030_p7 = por %p3029_p4, %p3028_p5 }
  0x24   : > { %p3024_p2 = pneg %p3023_p0 }
  0x26   : > { %p3031_p9 = pnand %p3030_p7, %p3024_p2 }
  0x28   : > { %3034 = shalt.err (!%p3031_p9)
}
  0x29   : > { %s3288_s23 = smov 256   ;;  %s3289_s28 = smov 16  }
  0x2a   : > { %2797 = dma.hbm_to_vmem [thread:$0]  (!%p3379_p6), %s3883_s1, 2048, %s3368_s29, [#allocation6], %s3288_s23, %s3288_s23, %s3289_s28  }
  0x2b   : > { %s3035_s16 = scalar_lea.hbm %s3870_s3, 9216 }
  0x2c   : > { %p3036_p4 = scmp.ne.s32.totalorder %s3870_s3, %s3035_s16  ;;  %p3042_p12 = scmp.lt.u32.totalorder %s3035_s16, %s3870_s3 }
  0x2e   : > { %p3038_p10 = pnand %p3036_p4, %p3395_p8 }
  0x30   : > { %p3039_p11 = pneg %p3038_p10 }
  0x32   : > { %p3044_p13 = pnand %p3042_p12, %p3039_p11 }
  0x34   : > { %3047 = shalt.err (!%p3044_p13)
}
  0x35   : > { %s3048_s29 = scalar_lea.vmem %s3383_s10, 9216  ;;  %p3056_p7 = scmp.lt.s32.totalorder %s3383_s10, %s3383_s10 }
  0x36   : > { %p3049_p0 = scmp.ne.s32.totalorder %s3383_s10, %s3048_s29  ;;  %p3057_p9 = scmp.lt.s32.totalorder %s3048_s29, %s3048_s29 }
  0x38   : > { %p3051_p2 = pnand %p3049_p0, %p3395_p8  ;;  %p3058_p4 = por %p3057_p9, %p3056_p7 }
  0x3a   : > { %p3052_p5 = pneg %p3051_p2 }
  0x3c   : > { %p3059_p10 = pnand %p3058_p4, %p3052_p5 }
  0x3e   : > { %3062 = shalt.err (!%p3059_p10)
}
  0x3f   : > { %s3877_s22 = smov 64   ;;  %s3878_s23 = smov 4  }
  0x40   : > { %2803 = dma.hbm_to_vmem [thread:$0]  (!%p3379_p6), %s3870_s3, 9216, %s3383_s10, [#allocation9], %s3877_s22, %s3877_s22, %s3878_s23  }
  0x41   : > { %s3063_s15 = scalar_lea.hbm %s3872_s5, 3072 }
  0x42   : > { %p3064_p11 = scmp.ne.s32.totalorder %s3872_s5, %s3063_s15  ;;  %p3070_p0 = scmp.lt.u32.totalorder %s3063_s15, %s3872_s5 }
  0x44   : > { %p3066_p12 = pnand %p3064_p11, %p3395_p8 }
  0x46   : > { %p3067_p13 = pneg %p3066_p12 }
  0x48   : > { %p3072_p2 = pnand %p3070_p0, %p3067_p13 }
  0x4a   : > { %3075 = shalt.err (!%p3072_p2)
}
  0x4b   : > { %s3076_s21 = scalar_lea.vmem %s270_s13, 3072  ;;  %p3084_p4 = scmp.lt.s32.totalorder %s270_s13, %s270_s13 }
  0x4c   : > { %p3077_p5 = scmp.ne.s32.totalorder %s270_s13, %s3076_s21  ;;  %p3085_p10 = scmp.lt.s32.totalorder %s3076_s21, %s3076_s21 }
  0x4e   : > { %p3079_p7 = pnand %p3077_p5, %p3395_p8  ;;  %p3086_p1 = por %p3085_p10, %p3084_p4 }
  0x50   : > { %p3080_p9 = pneg %p3079_p7 }
  0x52   : > { %p3087_p3 = pnand %p3086_p1, %p3080_p9 }
  0x54   : > { %3090 = shalt.err (!%p3087_p3)
}
  0x55   : > { %2809 = dma.hbm_to_vmem [thread:$0]  (!%p3379_p6), %s3872_s5, 3072, %s270_s13, [#allocation12], %s3877_s22, %s3877_s22, %s3878_s23  }
  0x56   : > { %s3292_s28 = smov [#allocation7]   ;;  %s3293_s12 = smov [#allocation10]  }
  0x57   : > { %s235_s9 = sshll.u32 %s3292_s28, 4  ;;  %s259_s14 = sshll.u32 %s3293_s12, 4  ;;  %s236_s9 = int_to_ptr.vmem [resolvable:$true] %s235_s9  ;;  %s260_s14 = int_to_ptr.vmem [resolvable:$true] %s259_s14 }
  0x58   : > { %s3091_s17 = scalar_lea.hbm %s3869_s2, 64 }
  0x59   : > { %p3092_p1 = scmp.ne.s32.totalorder %s3869_s2, %s3091_s17  ;;  %p3098_p12 = scmp.lt.u32.totalorder %s3091_s17, %s3869_s2 }
  0x5b   : > { %p3094_p3 = pnand %p3092_p1, %p3395_p8 }
  0x5d   : > { %p3095_p11 = pneg %p3094_p3 }
  0x5f   : > { %p3100_p13 = pnand %p3098_p12, %p3095_p11 }
  0x61   : > { %3103 = shalt.err (!%p3100_p13)
}
  0x62   : > { %s3104_s13 = scalar_lea.vmem %s236_s9, 64  ;;  %p3112_p7 = scmp.lt.s32.totalorder %s236_s9, %s236_s9 }
  0x63   : > { %p3105_p0 = scmp.ne.s32.totalorder %s236_s9, %s3104_s13  ;;  %p3113_p9 = scmp.lt.s32.totalorder %s3104_s13, %s3104_s13 }
  0x65   : > { %p3107_p2 = pnand %p3105_p0, %p3395_p8  ;;  %p3114_p4 = por %p3113_p9, %p3112_p7 }
  0x67   : > { %p3108_p5 = pneg %p3107_p2 }
  0x69   : > { %p3115_p10 = pnand %p3114_p4, %p3108_p5 }
  0x6b   : > { %3118 = shalt.err (!%p3115_p10)
}
  0x6c   : > { %2800 = dma.hbm_to_vmem [thread:$0]  (!%p3379_p6), %s3869_s2, 64, %s236_s9, [#allocation6]  }
  0x6d   : > { %s3119_s16 = scalar_lea.hbm %s3871_s4, 16 }
  0x6e   : > { %p3120_p1 = scmp.ne.s32.totalorder %s3871_s4, %s3119_s16  ;;  %p3126_p12 = scmp.lt.u32.totalorder %s3119_s16, %s3871_s4 }
  0x70   : > { %p3122_p3 = pnand %p3120_p1, %p3395_p8 }
  0x72   : > { %p3123_p11 = pneg %p3122_p3 }
  0x74   : > { %p3128_p13 = pnand %p3126_p12, %p3123_p11 }
  0x76   : > { %3131 = shalt.err (!%p3128_p13)
}
  0x77   : > { %s3132_s10 = scalar_lea.vmem %s260_s14, 16  ;;  %s3139_s9 = scalar_lea.vmem %s260_s14, 32 }
  0x78   : > { %p3133_p0 = scmp.ne.s32.totalorder %s260_s14, %s3132_s10  ;;  %p3140_p7 = scmp.lt.s32.totalorder %s260_s14, %s260_s14 }
  0x79   : > { %p3141_p9 = scmp.lt.s32.totalorder %s3139_s9, %s3132_s10 }
  0x7a   : > { %p3135_p2 = pnand %p3133_p0, %p3395_p8 }
  0x7b   : > { %p3142_p4 = por %p3141_p9, %p3140_p7 }
  0x7c   : > { %p3136_p5 = pneg %p3135_p2 }
  0x7e   : > { %p3143_p10 = pnand %p3142_p4, %p3136_p5 }
  0x80   : > { %3146 = shalt.err (!%p3143_p10)
}
  0x81   : > { %2806 = dma.hbm_to_vmem [thread:$0]  (!%p3379_p6), %s3871_s4, 16, %s260_s14, [#allocation9]  }
  0x82   : > { %s3294_s28 = smov [#allocation13]   ;;  %s3147_s17 = scalar_lea.hbm %s3873_s6, 16 }
  0x83   : > { %s283_s12 = sshll.u32 %s3294_s28, 4  ;;  %p3148_p1 = scmp.ne.s32.totalorder %s3873_s6, %s3147_s17  ;;  %s284_s12 = int_to_ptr.vmem [resolvable:$true] %s283_s12 }
  0x84   : > { %p3154_p12 = scmp.lt.u32.totalorder %s3147_s17, %s3873_s6 }
  0x85   : > { %p3150_p3 = pnand %p3148_p1, %p3395_p8 }
  0x87   : > { %p3151_p11 = pneg %p3150_p3 }
  0x89   : > { %p3156_p13 = pnand %p3154_p12, %p3151_p11 }
  0x8b   : > { %3159 = shalt.err (!%p3156_p13)
}
  0x8c   : > { %s3160_s14 = scalar_lea.vmem %s284_s12, 16  ;;  %s3167_s9 = scalar_lea.vmem %s284_s12, 32 }
  0x8d   : > { %p3161_p0 = scmp.ne.s32.totalorder %s284_s12, %s3160_s14  ;;  %p3168_p7 = scmp.lt.s32.totalorder %s284_s12, %s284_s12 }
  0x8e   : > { %p3169_p9 = scmp.lt.s32.totalorder %s3167_s9, %s3160_s14 }
  0x8f   : > { %p3163_p2 = pnand %p3161_p0, %p3395_p8 }
  0x90   : > { %p3170_p4 = por %p3169_p9, %p3168_p7 }
  0x91   : > { %p3164_p5 = pneg %p3163_p2 }
  0x93   : > { %p3171_p10 = pnand %p3170_p4, %p3164_p5 }
  0x95   : > { %3174 = shalt.err (!%p3171_p10)
}
  0x96   : > { %2812 = dma.hbm_to_vmem [thread:$0]  (!%p3379_p6), %s3873_s6, 16, %s284_s12, [#allocation12]  }
  0x97   : > { %s2264_s19 = sadd.s32 4294967294, %s3283_s27   ;;  %s3520_s11 = sadd.s32 1, %s3283_s27  }
  0x98   : > { %s30_s28 = ssub.s32 %s3283_s27, %s3520_s11  ;;  %s33_s15 = sadd.s32 1, %s3279_s26 }
  0x99   : > { %p31_p8 = scmp.eq.s32.totalorder %s30_s28, 0  ;;  %p40_p1 = scmp.ne.s32.totalorder %s3279_s26, %s3275_s25 }
  0x9a   : > { %p41_p3 = scmp.eq.s32.totalorder %s3283_s27, 0  ;;  %p46_p11 = scmp.ne.s32.totalorder %s3275_s25, %s3271_s24 }
  0x9b   : > { %s3531_s16 = scalar_select %p31_p8, %s3279_s26, %s33_s15  }
  0x9c   : > { %p42_p12 = por %p41_p3, %p40_p1  ;;  %p3885_p13 = scmp.eq.s32.totalorder %s3363_s30, 0 }
  0x9d   : > { %p196_p6 = scmp.eq.s32.totalorder %s3363_s30, 1  ;;  %p202_p2 = scmp.eq.s32.totalorder %s2264_s19, 1 }
  0x9e   : > { %p3535_p0 = por %p3885_p13, %p46_p11  ;;  %p2827_p5 = scmp.lt.s32.totalorder %s3283_s27, 2 }
  0x9f   : > { %s294_s12 = sand.u32 1, %s3279_s26   ;;  %p3542_p7 = por %p196_p6, %p40_p1 }
  0xa0   : > { %p3546_p9 = por %p202_p2, %p46_p11  ;;  %s2763_s21 = smul.u32 40, %s294_s12 }
  0xa1   : > { %s3887_s18 = scalar_select %p3542_p7, 1, 0 }
  0xa2   : > { %s3888_s20 = scalar_select %p3546_p9, 1, 0 }
  0xa3   : > { %s2764_s10 = smul.u32 640, %s3283_s27  ;;  %p3551_p4 = pnand %p2827_p5, %p42_p12 }
  0xa4   : > { %s298_s19 = scalar_lea.vmem [#allocation2], %s2763_s21  ;;  %s3562_s15 = scalar_lea.sflag [#allocation3], %s294_s12 }
  0xa5   : > { %s3558_s29 = scalar_lea.hbm %s3867_s0, %s2764_s10  ;;  %s305_s28 = sshll.u32 %s298_s19, 4  ;;  %s3560_s28 = int_to_ptr.vmem [resolvable:$true] %s305_s28 }
  0xa6   : > { %s3175_s22 = scalar_lea.hbm %s3558_s29, 640  ;;  %p3177_p8 = pneg %p3551_p4 }
  0xa7   : > { %p3176_p10 = scmp.ne.s32.totalorder %s3558_s29, %s3175_s22  ;;  %s3180_s13 = scalar_lea.hbm %s3867_s0, 1280 }
  0xa8   : > { %p3181_p11 = scmp.lt.u32.totalorder %s3558_s29, %s3867_s0  ;;  %p3182_p12 = scmp.lt.u32.totalorder %s3180_s13, %s3175_s22 }
  0xa9   : > { %p3178_p1 = pnand %p3177_p8, %p3176_p10  ;;  %p3184_p6 = scmp.lt.u32.totalorder %s3175_s22, %s3558_s29 }
  0xaa   : > { %p3183_p13 = por %p3182_p12, %p3181_p11 }
  0xab   : > { %p3179_p3 = pneg %p3178_p1 }
  0xac   : > { %p3185_p2 = por %p3184_p6, %p3183_p13 }
  0xae   : > { %p3186_p5 = pnand %p3185_p2, %p3179_p3 }
  0xb0   : > { %3189 = shalt.err (!%p3186_p5)
}
  0xb1   : > { %s3190_s12 = scalar_lea.vmem %s3560_s28, 640  ;;  %s3295_s21 = smov [#allocation2]  }
  0xb2   : > { %p3191_p10 = scmp.ne.s32.totalorder %s3560_s28, %s3190_s12  ;;  %s3195_s19 = sshll.u32 %s3295_s21, 4  ;;  %s3196_s19 = int_to_ptr.vmem [resolvable:$false] %s3195_s19 }
  0xb3   : > { %s3197_s1 = scalar_lea.vmem %s3196_s19, 1280  ;;  %p3198_p7 = scmp.lt.s32.totalorder %s3560_s28, %s3196_s19 }
  0xb4   : > { %p3193_p1 = pnand %p3191_p10, %p3177_p8  ;;  %p3199_p11 = scmp.lt.s32.totalorder %s3197_s1, %s3190_s12 }
  0xb6   : > { %p3194_p9 = pneg %p3193_p1  ;;  %p3200_p12 = por %p3199_p11, %p3198_p7 }
  0xb8   : > { %p3201_p13 = pnand %p3200_p12, %p3194_p9 }
  0xba   : > { %3204 = shalt.err (!%p3201_p13)
}
  0xbb   : > { %s3890_s22 = smov 4   ;;  %s3891_s23 = smov 64  }
  0xbc   : > { %2816 = dma.hbm_to_vmem [thread:$0]  (!%p3551_p4), %s3558_s29, 640, %s3560_s28, %s3562_s15, %s3891_s23, %s3891_s23, %s3890_s22  }
  0xbd   : > { %p3892_p8 = scmp.ne.s32.totalorder %s3881_s8, 0 }
  0xbe   : > { %s3596_s10 = sand.u32 (!%p3892_p8), 1, %s3275_s25  }
  0xbf   : > { %317 = sbr.rel (%p3892_p8) target bundleno = 1060 (0x424), region = 48  ;;  %s320_s13 = scalar_lea.sflag (!%p3892_p8), [#allocation3], %s3596_s10 }
  0xc0   : > { %s2765_s9 = smul.u32 (!%p3892_p8), 40, %s3596_s10 }
  0xc2   : > { %s3600_s12 = scalar_lea.vmem (!%p3892_p8), [#allocation2], %s2765_s9 }
  0xc6   : > { %3250 = dma.done.wait (%p3535_p0), %s320_s13, 640  }
  0xc7   : > { %3252 = vsyncadd (%p3535_p0), %s320_s13, 4294966656  ;;  %p3893_p7 = scmp.eq.s32.totalorder %s3363_s30, 0 }
  0xc9   : > { %3254 = dma.done.wait (%p3893_p7), [#allocation6], 2112   ;;  %p3894_p9 = pmov %p3893_p7 }
  0xca   : > { %p3895_p4 = pmov %p3893_p7 }
  0xcb   : > { %3256 = vsyncadd (%p3894_p9), [#allocation6], 4294965184 }
  0xcc   : > { %3258 = dma.done.wait (%p3895_p4), [#allocation9], 9232   ;;  %p3896_p3 = pmov %p3895_p4 }
  0xce   : > { %3260 = vsyncadd (%p3896_p3), [#allocation9], 4294958064  ;;  %p3897_p6 = pmov %p3896_p3 }
  0xcf   : > { %p3898_p2 = pmov %p3896_p3 }
  0xd0   : > { %3262 = dma.done.wait (%p3897_p6), [#allocation12], 3088  }
  0xd1   : > { %3264 = vsyncadd (%p3898_p2), [#allocation12], 4294964208  ;;  %v3296_v0 = vmov 0   ;;  %v2882_v1 = vld [vmem:[#allocation5 + $0x4] ss:$16 sps:$4 sm:$0xff]   ;;  %vm532_vm0 = vcmask 523264   ;;  %v407_v56 = vlaneseq }
  0xd2   : > { %580 = vmatprep.mubr.bf16.mxu0 %v3296_v0  ;;  %661 = vmatprep.mubr.bf16.mxu1 %v3296_v0  ;;  %v2884_v2 = vld [vmem:[#allocation5 + $0xc] ss:$16 sps:$4 sm:$0xff]   ;;  %v2886_v3 = vld [vmem:[#allocation5] ss:$16 sps:$4 sm:$0xff]   ;;  %v2887_v4 = vld [vmem:[#allocation5 + $0x8] ss:$16 sps:$4 sm:$0xff]  }
  0xd3   : > { %548 = vmatprep.subr.bf16.mxu0 %v2882_v1  ;;  %629 = vmatprep.subr.bf16.mxu1 %v2884_v2  ;;  %v2888_v5 = vld [vmem:[#allocation5 + $0x24] ss:$16 sps:$4 sm:$0xff]   ;;  %v2890_v6 = vld [vmem:[#allocation5 + $0x2c] ss:$16 sps:$4 sm:$0xff]   ;;  %v2892_v7 = vld [vmem:[#allocation5 + $0x20] ss:$16 sps:$4 sm:$0xff]  }
  0xd4   : > { %549 = vmatpush1.bf16.msra.mxu0 %v2886_v3  ;;  %630 = vmatpush1.bf16.msra.mxu1 %v2887_v4  ;;  %v2893_v8 = vld [vmem:[#allocation5 + $0x28] ss:$16 sps:$4 sm:$0xff]   ;;  %v2894_v9 = vld [vmem:[#allocation5 + $0x44] ss:$16 sps:$4 sm:$0xff]   ;;  %v2896_v10 = vld [vmem:[#allocation5 + $0x4c] ss:$16 sps:$4 sm:$0xff]  }
  0xd5   : > { %550 = vmatprep.subr.bf16.mxu0 %v2888_v5  ;;  %631 = vmatprep.subr.bf16.mxu1 %v2890_v6  ;;  %v2898_v11 = vld [vmem:[#allocation5 + $0x40] ss:$16 sps:$4 sm:$0xff]   ;;  %v2899_v12 = vld [vmem:[#allocation5 + $0x48] ss:$16 sps:$4 sm:$0xff]   ;;  %v2900_v13 = vld [vmem:[#allocation5 + $0x64] ss:$16 sps:$4 sm:$0xff]  }
  0xd6   : > { %v2902_v14 = vld [vmem:[#allocation5 + $0x6c] ss:$16 sps:$4 sm:$0xff]   ;;  %v2904_v15 = vld [vmem:[#allocation5 + $0x60] ss:$16 sps:$4 sm:$0xff]   ;;  %v2905_v16 = vld [vmem:[#allocation5 + $0x68] ss:$16 sps:$4 sm:$0xff]  }
  0xd7   : > { %v2906_v17 = vld [vmem:[%s3600_s12] sm:$0xff]   ;;  %v2911_v18 = vld [vmem:[#allocation8 + $0xc0] sm:$0xff]   ;;  %v3297_v55 = vmov 0.0   ;;  %v408_v57 = vshrl.u32 %v407_v56, 7  ;;  %v405_v60 = vld [vmem:[#allocation7] sm:$0xf] }
  0xd8   : > { %551 = vmatpush1.bf16.msra.mxu0 %v2892_v7  ;;  %632 = vmatpush1.bf16.msra.mxu1 %v2893_v8  ;;  %v2912_v19 = vld [vmem:[#allocation8 + $0x80] sm:$0xff]   ;;  %v2913_v20 = vld [vmem:[#allocation8 + $0xc8] sm:$0xff]   ;;  %v2917_v25 = vld [vmem:[#allocation8 + $0xd0] sm:$0xff]   ;;  %vm1169_vm1 = vsmask.f32 7424  ;;  %vm3298_vm2 = vmmov 0  }
  0xd9   : > { %552 = vmatprep.subr.bf16.mxu0 %v2894_v9  ;;  %633 = vmatprep.subr.bf16.mxu1 %v2896_v10  ;;  %v2914_v21 = vld [vmem:[#allocation8 + $0x88] sm:$0xff]   ;;  %v2915_v22 = vld [vmem:[#allocation8 + $0x40] sm:$0xff]   ;;  %v2918_v26 = vld [vmem:[#allocation8 + $0x90] sm:$0xff]   ;;  %v409_v58 = vsub.s32 0, %v408_v57  ;;  %v417_v59 = vsub.s32 2, %v408_v57  ;;  %v413_v61 = vsub.s32 1, %v408_v57 }
  0xda   : > { %v2907_v23 = vld [vmem:[%s3600_s12 + $0x8] sm:$0xff]   ;;  %v2919_v27 = vld [vmem:[#allocation8 + $0x48] sm:$0xff]   ;;  %v421_v62 = vsub.s32 3, %v408_v57  ;;  %s2281_s8 = sshll.u32 %s3596_s10, 4  ;;  %s2416_s29 = sshll.u32 %s3363_s30, 8 }
  0xdb   : > { %v2916_v24 = vld [vmem:[#allocation8] sm:$0xff]   ;;  %v2920_v28 = vld [vmem:[#allocation8 + $0x8] sm:$0xff]   ;;  %v2921_v29 = vld [vmem:[#allocation8 + $0xd8] sm:$0xff]   ;;  %v3644_v63 = vrot.slane %v405_v60, %v409_v58  ;;  %v3648_v1 = vrot.slane %v405_v60, %v413_v61  ;;  %s377_s17 = scalar_lea.vmem [#allocation14], %s2281_s8  ;;  %s3823_s21 = scalar_lea.hbm %s3874_s7, %s2416_s29 }
  0xdc   : > { %553 = vmatpush1.bf16.msra.mxu0 %v2898_v11  ;;  %634 = vmatpush1.bf16.msra.mxu1 %v2899_v12  ;;  %v2922_v30 = vld [vmem:[#allocation8 + $0x50] sm:$0xff]   ;;  %v2923_v31 = vld [vmem:[#allocation8 + $0x98] sm:$0xff]   ;;  %v2926_v35 = vld [vmem:[#allocation8 + $0xe0] sm:$0xff]   ;;  %v3650_v2 = vrot.slane %v405_v60, %v421_v62  ;;  %s2134_s14 = sshll.u32 %s377_s17, 4  ;;  %s2121_s19 = scalar_lea.sflag [#allocation4], %s3596_s10  ;;  %s3818_s14 = int_to_ptr.vmem [resolvable:$true] %s2134_s14 }
  0xdd   : > { %554 = vmatprep.subr.bf16.mxu0 %v2900_v13  ;;  %635 = vmatprep.subr.bf16.mxu1 %v2902_v14  ;;  %v2908_v32 = vld [vmem:[%s3600_s12 + $0x10] sm:$0xff]   ;;  %v2924_v33 = vld [vmem:[#allocation8 + $0x10] sm:$0xff]   ;;  %s3205_s30 = scalar_lea.vmem %s3818_s14, 256  ;;  %p3899_p5 = scmp.ne.s32.totalorder %s3887_s18, 0 }
  0xde   : > { %v2925_v34 = vld [vmem:[#allocation8 + $0x58] sm:$0xff]   ;;  %v2928_v37 = vld [vmem:[#allocation8 + $0xa0] sm:$0xff]   ;;  %v2931_v40 = vld [vmem:[#allocation8 + $0xe8] sm:$0xff]   ;;  %p3206_p0 = scmp.ne.s32.totalorder %s3818_s14, %s3205_s30  ;;  %s3299_s1 = smov [#allocation14]  }
  0xdf   : > { %v2927_v36 = vld [vmem:[#allocation8 + $0x18] sm:$0xff]   ;;  %v2929_v38 = vld [vmem:[#allocation8 + $0x60] sm:$0xff]   ;;  %v2932_v41 = vld [vmem:[#allocation8 + $0xa8] sm:$0xff]   ;;  %s3209_s22 = sshll.u32 %s3299_s1, 4  ;;  %s3210_s22 = int_to_ptr.vmem [resolvable:$false] %s3209_s22 }
  0xe0   : > { %555 = vmatpush1.bf16.msra.mxu0 %v2904_v15  ;;  %636 = vmatpush1.bf16.msra.mxu1 %v2905_v16  ;;  %v2930_v39 = vld [vmem:[#allocation8 + $0x20] sm:$0xff]   ;;  %v2933_v42 = vld [vmem:[#allocation8 + $0x68] sm:$0xff]   ;;  %v2935_v46 = vld [vmem:[#allocation8 + $0xf0] sm:$0xff]   ;;  %p3207_p10 = pnand %p3206_p0, %p3899_p5  ;;  %s3211_s23 = scalar_lea.vmem %s3210_s22, 512 }
  0xe1   : > { %2451 = vmatprep.subr.bf16.mxu1 %v2911_v18  ;;  %2417 = vmatprep.subr.bf16.mxu0 %v2915_v22  ;;  %v2909_v43 = vld [vmem:[%s3600_s12 + $0x18] sm:$0xff]   ;;  %v2910_v45 = vld [vmem:[%s3600_s12 + $0x20] sm:$0xff]   ;;  %p3212_p11 = scmp.lt.s32.totalorder %s3818_s14, %s3210_s22  ;;  %p3213_p12 = scmp.lt.s32.totalorder %s3211_s23, %s3205_s30 }
  0xe2   : > { %v2934_v44 = vld [vmem:[#allocation8 + $0x28] sm:$0xff]   ;;  %v2937_v47 = vld [vmem:[#allocation8 + $0x70] sm:$0xff]   ;;  %v2939_v50 = vld [vmem:[#allocation8 + $0xf8] sm:$0xff]   ;;  %p3208_p1 = pneg %p3207_p10 }
  0xe3   : > { %2303 = vmatmul.mubr.msk.bf16.vlgmr.msra.gmra.mrb[0].mxu0 %vm532_vm0, %v2906_v17  ;;  %2308 = vmatmul.mubr.msk.bf16.vlgmr.msra.gmra.mrb[0].mxu1 %vm532_vm0, %v2906_v17  ;;  %v2936_v48 = vld [vmem:[#allocation8 + $0xb0] sm:$0xff]   ;;  %v2940_v51 = vld [vmem:[#allocation8 + $0x78] sm:$0xff]   ;;  %v2943_v54 = vld [vmem:[#allocation8 + $0x140] sm:$0xff]   ;;  %p3214_p13 = por %p3213_p12, %p3212_p11 }
  0xe4   : > { %590 = vmatprep.mubr.bf16.mxu0 %v3296_v0  ;;  %671 = vmatprep.mubr.bf16.mxu1 %v3296_v0  ;;  %v2938_v49 = vld [vmem:[#allocation8 + $0x30] sm:$0xff]   ;;  %v2941_v52 = vld [vmem:[#allocation8 + $0xb8] sm:$0xff]   ;;  %v2947_v56 = vld [vmem:[#allocation8 + $0x108] sm:$0xff]  }
  0xe5   : > { %2452 = vmatpush3.bf16.msra.mxu1 %v2912_v19  ;;  %2418 = vmatpush3.bf16.msra.mxu0 %v2916_v24  ;;  %v2942_v53 = vld [vmem:[#allocation8 + $0x38] sm:$0xff]   ;;  %v2948_v57 = vld [vmem:[#allocation8 + $0x188] sm:$0xff]   ;;  %v2949_v62 = vld [vmem:[#allocation8 + $0x150] sm:$0xff]   ;;  %p3215_p8 = pnand %p3214_p13, %p3208_p1 }
  0xe6   : > { %2453 = vmatprep.subr.bf16.mxu1 %v2913_v20  ;;  %2419 = vmatprep.subr.bf16.mxu0 %v2919_v27 }
  0xe9   : > { %2454 = vmatpush3.bf16.msra.mxu1 %v2914_v21  ;;  %2420 = vmatpush3.bf16.msra.mxu0 %v2920_v28 }
  0xea   : > { %2455 = vmatprep.subr.bf16.mxu1 %v2917_v25  ;;  %2421 = vmatprep.subr.bf16.mxu0 %v2922_v30 }
  0xeb   : > { %2304 = vmatmul.mubr.msk.bf16.gmra.mrb[4].mxu0 %vm532_vm0, %v2907_v23  ;;  %2309 = vmatmul.mubr.msk.bf16.gmra.mrb[4].mxu1 %vm532_vm0, %v2907_v23 }
  0xec   : > { %600 = vmatprep.mubr.bf16.mxu0 %v3296_v0  ;;  %681 = vmatprep.mubr.bf16.mxu1 %v3296_v0 }
  0xed   : > { %2456 = vmatpush3.bf16.msra.mxu1 %v2918_v26  ;;  %2422 = vmatpush3.bf16.msra.mxu0 %v2924_v33  ;;  %v2944_v33 = vld [vmem:[#allocation8 + $0x100] sm:$0xff]  }
  0xee   : > { %2457 = vmatprep.subr.bf16.mxu1 %v2921_v29  ;;  %2423 = vmatprep.subr.bf16.mxu0 %v2925_v34  ;;  %v2945_v34 = vld [vmem:[#allocation8 + $0x180] sm:$0xff]  }
  0xf1   : > { %2458 = vmatpush3.bf16.msra.mxu1 %v2923_v31  ;;  %2424 = vmatpush3.bf16.msra.mxu0 %v2927_v36 }
  0xf2   : > { %2459 = vmatprep.subr.bf16.mxu1 %v2926_v35  ;;  %2425 = vmatprep.subr.bf16.mxu0 %v2929_v38 }
  0xf3   : > { %2305 = vmatmul.mubr.msk.bf16.gmra.mrb[8].mxu0 %vm532_vm0, %v2908_v32  ;;  %2310 = vmatmul.mubr.msk.bf16.gmra.mrb[8].mxu1 %vm532_vm0, %v2908_v32 }
  0xf4   : > { %610 = vmatprep.mubr.bf16.mxu0 %v3296_v0  ;;  %691 = vmatprep.mubr.bf16.mxu1 %v3296_v0 }
  0xf5   : > { %2460 = vmatpush3.bf16.msra.mxu1 %v2928_v37  ;;  %2426 = vmatpush3.bf16.msra.mxu0 %v2930_v39 }
  0xf6   : > { %2461 = vmatprep.subr.bf16.mxu1 %v2931_v40  ;;  %2427 = vmatprep.subr.bf16.mxu0 %v2933_v42  ;;  %v2946_v40 = vld [vmem:[#allocation8 + $0x148] sm:$0xff]  }
  0xf9   : > { %2462 = vmatpush3.bf16.msra.mxu1 %v2932_v41  ;;  %2428 = vmatpush3.bf16.msra.mxu0 %v2934_v44 }
  0xfa   : > { %2463 = vmatprep.subr.bf16.mxu1 %v2935_v46  ;;  %2429 = vmatprep.subr.bf16.mxu0 %v2937_v47 }
  0xfb   : > { %2306 = vmatmul.mubr.msk.bf16.gmra.mrb[12].mxu0 %vm532_vm0, %v2909_v43  ;;  %2311 = vmatmul.mubr.msk.bf16.gmra.mrb[12].mxu1 %vm532_vm0, %v2909_v43 }
  0xfc   : > { %620 = vmatprep.mubr.bf16.mxu0 %v3296_v0  ;;  %699 = vmatprep.mubr.bf16.mxu1 %v3296_v0  ;;  %v3646_v0 = vrot.slane %v405_v60, %v417_v59 }
  0xfd   : > { %2464 = vmatpush3.bf16.msra.mxu1 %v2936_v48  ;;  %2430 = vmatpush3.bf16.msra.mxu0 %v2938_v49 }
  0xfe   : > { %2465 = vmatprep.subr.bf16.mxu1 %v2939_v50  ;;  %2431 = vmatprep.subr.bf16.mxu0 %v2940_v51 }
 0x101   : > { %2466 = vmatpush3.bf16.msra.mxu1 %v2941_v52  ;;  %2432 = vmatpush3.bf16.msra.mxu0 %v2942_v53 }
 0x102   : > { %2485 = vmatprep.subr.bf16.mxu0 %v2943_v54  ;;  %2579 = vmatprep.subr.bf16.mxu1 %v3297_v55 }
 0x103   : > { %2307 = vmatmul.mubr.msk.bf16.gmra.mrb[16].mxu0 %vm532_vm0, %v2910_v45  ;;  %2312 = vmatmul.mubr.msk.bf16.gmra.mrb[16].mxu1 %vm532_vm0, %v2910_v45 }
 0x1b6   : > { %v582_v3 = vpop.f32.mrb[0].mxu0  ;;  %v663_v4 = vpop.f32.mrb[0].mxu1 }
 0x1b7   : > { %v583_v5 = vadd.f32 %v582_v3, %v3644_v63  ;;  %v664_v6 = vadd.f32 %v663_v4, %v3646_v0  ;;  %v584_v7 = vpop.f32.mrb[1].mxu0  ;;  %v665_v8 = vpop.f32.mrb[1].mxu1 }
 0x1b8   : > { %v585_v9 = vadd.f32 %v584_v7, %v3648_v1  ;;  %v666_v10 = vadd.f32 %v665_v8, %v3650_v2  ;;  %v586_v11 = vpop.f32.mrb[2].mxu0  ;;  %v667_v12 = vpop.f32.mrb[2].mxu1 }
 0x1b9   : > { %v706_v13 = vmax.f32 %v583_v5, 0.0  ;;  %v587_v14 = vadd.f32 %v586_v11, %v3644_v63  ;;  %v668_v15 = vadd.f32 %v667_v12, %v3646_v0  ;;  %v588_v16 = vpop.f32.mrb[3].mxu0  ;;  %v669_v17 = vpop.f32.mrb[3].mxu1  ;;  %v708_v21 = vmax.f32 %v664_v6, 0.0 }
 0x1ba   : > { %v707_v18 = vmax.f32 %v585_v9, 0.0  ;;  %v589_v19 = vadd.f32 %v588_v16, %v3648_v1  ;;  %v670_v20 = vadd.f32 %v669_v17, %v3650_v2  ;;  %v709_v24 = vmax.f32 %v666_v10, 0.0 }
 0x1bb   : > { %v710_v22 = vmax.f32 %v587_v14, 0.0  ;;  %v712_v23 = vmax.f32 %v668_v15, 0.0  ;;  %v2951_v14 = vld [vmem:[#allocation8 + $0x190] sm:$0xff]  }
 0x1bc   : > { %v711_v25 = vmax.f32 %v589_v19, 0.0  ;;  %v713_v26 = vmax.f32 %v670_v20, 0.0 }
 0x1bd   : > { %v738_v27 = vpack.c.bf16 %v710_v22, %v706_v13  ;;  %v740_v28 = vpack.c.bf16 %v712_v23, %v708_v21  ;;  %v2950_v13 = vld [vmem:[#allocation8 + $0x110] sm:$0xff]  }
 0x1be   : > { %v3660_v29 = vpack.c.bf16 %v711_v25, %v707_v18  ;;  %v741_v30 = vpack.c.bf16 %v713_v26, %v709_v24  ;;  %v592_v31 = vpop.f32.mrb[4].mxu0  ;;  %v673_v32 = vpop.f32.mrb[4].mxu1  ;;  %v2952_v25 = vld [vmem:[#allocation8 + $0x158] sm:$0xff]  }
 0x1bf   : > { %v1173_v35 = vshll.u32 %v738_v27, 16  ;;  %v593_v36 = vadd.f32 %v592_v31, %v3644_v63  ;;  %v674_v37 = vadd.f32 %v673_v32, %v3646_v0  ;;  %v594_v38 = vpop.f32.mrb[5].mxu0  ;;  %v675_v39 = vpop.f32.mrb[5].mxu1  ;;  %v1171_v46 = vshrl.u32 %v738_v27, 16 }
 0x1c0   : > { %v1185_v41 = vshll.u32 %v3660_v29, 16  ;;  %v595_v42 = vadd.f32 %v594_v38, %v3648_v1  ;;  %v676_v43 = vadd.f32 %v675_v39, %v3650_v2  ;;  %1049 = vmatprep.mubr.bf16.mxu0 %v3660_v29  ;;  %1106 = vmatprep.mubr.bf16.mxu1 %v741_v30  ;;  %v596_v44 = vpop.f32.mrb[6].mxu0  ;;  %v677_v45 = vpop.f32.mrb[6].mxu1  ;;  %v1183_v3 = vshrl.u32 %v3660_v29, 16  ;;  %v2953_v38 = vld [vmem:[#allocation8 + $0x118] sm:$0xff]  }
 0x1c1   : > { %v714_v47 = vmax.f32 %v593_v36, 0.0  ;;  %v597_v48 = vadd.f32 %v596_v44, %v3644_v63  ;;  %1050 = vmatmul.mubr.bf16.vlgmr.msra.gmra.mrb[20].mxu0 %v738_v27  ;;  %1107 = vmatmul.mubr.bf16.vlgmr.msra.gmra.mrb[20].mxu1 %v740_v28  ;;  %v598_v49 = vpop.f32.mrb[7].mxu0  ;;  %v679_v50 = vpop.f32.mrb[7].mxu1  ;;  %v1175_v51 = vrot.slane %v1173_v35, 1  ;;  %v716_v52 = vmax.f32 %v674_v37, 0.0  ;;  %v2954_v39 = vld [vmem:[#allocation8 + $0x198] sm:$0xff]  }
 0x1c2   : > { %v715_v53 = vmax.f32 %v595_v42, 0.0  ;;  %v678_v54 = vadd.f32 %v677_v45, %v3646_v0  ;;  %2486 = vmatpush3.bf16.msra.mxu0 %v2944_v33  ;;  %2580 = vmatpush3.bf16.msra.mxu1 %v2945_v34  ;;  %v717_v58 = vmax.f32 %v676_v43, 0.0  ;;  %v599_v60 = vadd.f32 %v598_v49, %v3648_v1  ;;  %v2955_v42 = vld [vmem:[#allocation8 + $0x160] sm:$0xff]  }
 0x1c3   : > { %v718_v59 = vmax.f32 %v597_v48, 0.0  ;;  %v680_v61 = vadd.f32 %v679_v50, %v3650_v2  ;;  %2487 = vmatprep.subr.bf16.mxu0 %v2946_v40  ;;  %2581 = vmatprep.subr.bf16.mxu1 %v3297_v55  ;;  %v1187_v4 = vrot.slane %v1185_v41, 1  ;;  %v1176_v9 = vor.u32 %v1175_v51, %v1171_v46 }
 0x1c4   : > { %v720_v5 = vmax.f32 %v678_v54, 0.0  ;;  %v719_v7 = vmax.f32 %v599_v60, 0.0  ;;  %v2957_v54 = vld [vmem:[#allocation8 + $0x1a0] sm:$0xff]  }
 0x1c5   : > { %v3674_v6 = vpack.c.bf16 %v718_v59, %v714_v47  ;;  %v721_v8 = vmax.f32 %v680_v61, 0.0  ;;  %v1188_v26 = vor.u32 %v1187_v4, %v1183_v3 }
 0x1c6   : > { %v3676_v10 = vpack.c.bf16 %v720_v5, %v716_v52  ;;  %2488 = vmatpush3.bf16.msra.mxu0 %v2947_v56  ;;  %2582 = vmatpush3.bf16.msra.mxu1 %v2948_v57  ;;  %v602_v11 = vpop.f32.mrb[8].mxu0  ;;  %v683_v12 = vpop.f32.mrb[8].mxu1  ;;  %v3678_v15 = vpack.c.bf16 %v719_v7, %v715_v53  ;;  %v2956_v53 = vld [vmem:[#allocation8 + $0x120] sm:$0xff]   ;;  %v2958_v5 = vld [vmem:[#allocation8 + $0x168] sm:$0xff]  }
 0x1c7   : > { %v745_v16 = vpack.c.bf16 %v721_v8, %v717_v58  ;;  %v603_v17 = vadd.f32 %v602_v11, %v3644_v63  ;;  %v684_v18 = vadd.f32 %v683_v12, %v3646_v0  ;;  %v604_v19 = vpop.f32.mrb[9].mxu0  ;;  %v685_v20 = vpop.f32.mrb[9].mxu1  ;;  %2489 = vmatprep.subr.bf16.mxu0 %v2949_v62  ;;  %2583 = vmatprep.subr.bf16.mxu1 %v3297_v55  ;;  %v1178_v27 = vshll.u32 %v3674_v6, 16 }
 0x1c8   : > { %v605_v21 = vadd.f32 %v604_v19, %v3648_v1  ;;  %v686_v22 = vadd.f32 %v685_v20, %v3650_v2  ;;  %v606_v23 = vpop.f32.mrb[10].mxu0  ;;  %v687_v24 = vpop.f32.mrb[10].mxu1  ;;  %1057 = vmatprep.mubr.bf16.mxu0 %v3678_v15  ;;  %v1194_v33 = vshrl.u32 %v3674_v6, 16  ;;  %v1190_v43 = vshll.u32 %v3678_v15, 16  ;;  %v2960_v19 = vld [vmem:[#allocation8 + $0x1a8] sm:$0xff]  }
 0x1c9   : > { %v722_v28 = vmax.f32 %v603_v17, 0.0  ;;  %v724_v29 = vmax.f32 %v684_v18, 0.0  ;;  %v607_v30 = vadd.f32 %v606_v23, %v3644_v63  ;;  %1114 = vmatprep.mubr.bf16.mxu1 %v745_v16  ;;  %v608_v31 = vpop.f32.mrb[11].mxu0  ;;  %v689_v32 = vpop.f32.mrb[11].mxu1  ;;  %v688_v36 = vadd.f32 %v687_v24, %v3646_v0  ;;  %1058 = vmatmul.mubr.bf16.gmra.mrb[24].mxu0 %v3674_v6  ;;  %v2959_v18 = vld [vmem:[#allocation8 + $0x128] sm:$0xff]   ;;  %v2961_v24 = vld [vmem:[#allocation8 + $0x170] sm:$0xff]  }
 0x1ca   : > { %v723_v34 = vmax.f32 %v605_v21, 0.0  ;;  %v725_v35 = vmax.f32 %v686_v22, 0.0  ;;  %2490 = vmatpush3.bf16.msra.mxu0 %v2950_v13  ;;  %2584 = vmatpush3.bf16.msra.mxu1 %v2951_v14  ;;  %v609_v37 = vadd.f32 %v608_v31, %v3648_v1  ;;  %v690_v41 = vadd.f32 %v689_v32, %v3650_v2 }
 0x1cb   : > { %v726_v40 = vmax.f32 %v607_v30, 0.0  ;;  %1115 = vmatmul.mubr.bf16.gmra.mrb[24].mxu1 %v3676_v10  ;;  %v1180_v44 = vrot.slane %v1178_v27, 1  ;;  %v1202_v45 = vshrl.u32 %v3678_v15, 16  ;;  %v728_v46 = vmax.f32 %v688_v36, 0.0  ;;  %2491 = vmatprep.subr.bf16.mxu0 %v2952_v25 }
 0x1cc   : > { %v727_v47 = vmax.f32 %v609_v37, 0.0  ;;  %2585 = vmatprep.subr.bf16.mxu1 %v3297_v55  ;;  %v729_v49 = vmax.f32 %v690_v41, 0.0  ;;  %v1192_v50 = vrot.slane %v1190_v43, 1 }
 0x1cd   : > { %v3697_v48 = vpack.c.bf16 %v726_v40, %v722_v28  ;;  %v3700_v2 = vsel %vm1169_vm1, %v1176_v9, %v1180_v44  ;;  %v3702_v51 = vpack.c.bf16 %v728_v46, %v724_v29  ;;  %v1196_v57 = vor.u32 %v1194_v33, %v1180_v44 }
 0x1ce   : > { %v3704_v52 = vpack.c.bf16 %v727_v47, %v723_v34  ;;  %2492 = vmatpush3.bf16.msra.mxu0 %v2953_v38  ;;  %2586 = vmatpush3.bf16.msra.mxu1 %v2954_v39  ;;  %v612_v56 = vpop.f32.mrb[12].mxu0  ;;  %v693_v58 = vpop.f32.mrb[12].mxu1  ;;  %v749_v59 = vpack.c.bf16 %v729_v49, %v725_v35  ;;  %v1193_v60 = vsel %vm1169_vm1, %v1188_v26, %v1192_v50  ;;  %v2963_v34 = vld [vmem:[#allocation8 + $0x1b0] sm:$0xff]   ;;  %v2964_v38 = vld [vmem:[#allocation8 + $0x178] sm:$0xff]  }
 0x1cf   : > { %2493 = vmatprep.subr.bf16.mxu0 %v2955_v42  ;;  %2587 = vmatprep.subr.bf16.mxu1 %v3297_v55  ;;  %v613_v61 = vadd.f32 %v612_v56, %v3644_v63  ;;  %v614_v62 = vpop.f32.mrb[13].mxu0  ;;  %v1198_v3 = vshll.u32 %v3697_v48, 16  ;;  %v695_v4 = vpop.f32.mrb[13].mxu1  ;;  %v1204_v9 = vor.u32 %v1202_v45, %v1192_v50  ;;  %v694_v23 = vadd.f32 %v693_v58, %v3646_v0  ;;  %v2966_v58 = vld [vmem:[#allocation8 + $0x1b8] sm:$0xff]  }
 0x1d0   : > { %1065 = vmatprep.mubr.bf16.mxu0 %v3704_v52  ;;  %v615_v7 = vadd.f32 %v614_v62, %v3648_v1  ;;  %v616_v8 = vpop.f32.mrb[14].mxu0  ;;  %v1206_v11 = vshll.u32 %v3704_v52, 16  ;;  %v696_v12 = vpop.f32.mrb[14].mxu1  ;;  %1122 = vmatprep.mubr.bf16.mxu1 %v749_v59  ;;  %v1210_v27 = vshrl.u32 %v3697_v48, 16  ;;  %v1218_v29 = vshrl.u32 %v3704_v52, 16  ;;  %v2967_v4 = vld [vmem:[#allocation8 + $0x1c0] sm:$0xff]  }
 0x1d1   : > { %v730_v13 = vmax.f32 %v613_v61, 0.0  ;;  %v617_v14 = vadd.f32 %v616_v8, %v3644_v63  ;;  %v618_v15 = vpop.f32.mrb[15].mxu0  ;;  %v1200_v16 = vrot.slane %v1198_v3, 1  ;;  %v698_v17 = vpop.f32.mrb[15].mxu1  ;;  %1066 = vmatmul.mubr.bf16.gmra.mrb[28].mxu0 %v3697_v48  ;;  %v697_v28 = vadd.f32 %v696_v12, %v3646_v0  ;;  %v2962_v0 = vld [vmem:[#allocation8 + $0x130] sm:$0xff]  }
 0x1d2   : > { %2494 = vmatpush3.bf16.msra.mxu0 %v2956_v53  ;;  %2588 = vmatpush3.bf16.msra.mxu1 %v2957_v54  ;;  %v731_v20 = vmax.f32 %v615_v7, 0.0  ;;  %v619_v21 = vadd.f32 %v618_v15, %v3648_v1  ;;  %v1208_v22 = vrot.slane %v1206_v11, 1  ;;  %v732_v31 = vmax.f32 %v694_v23, 0.0  ;;  %v2969_v12 = vld [vmem:[#allocation8 + $0x1d0] sm:$0xff]   ;;  %v2975_v15 = vld [vmem:[#allocation8 + $0x200] sm:$0xff]  }
 0x1d3   : > { %1123 = vmatmul.mubr.bf16.gmra.mrb[28].mxu1 %v3702_v51  ;;  %v733_v25 = vmax.f32 %v617_v14, 0.0  ;;  %v3719_v26 = vsel %vm1169_vm1, %v1196_v57, %v1200_v16  ;;  %2495 = vmatprep.subr.bf16.mxu0 %v2958_v5  ;;  %v735_v33 = vmax.f32 %v697_v28, 0.0  ;;  %v1212_v41 = vor.u32 %v1210_v27, %v1200_v16  ;;  %v2965_v57 = vld [vmem:[#allocation8 + $0x138] sm:$0xff]   ;;  %v2976_v16 = vld [vmem:[#allocation8 + $0x208] sm:$0xff]   ;;  %v2977_v17 = vld [vmem:[#allocation8 + $0x210] sm:$0xff]  }
 0x1d4   : > { %2589 = vmatprep.subr.bf16.mxu1 %v3297_v55  ;;  %v734_v1 = vmax.f32 %v619_v21, 0.0  ;;  %v1209_v30 = vsel %vm1169_vm1, %v1204_v9, %v1208_v22  ;;  %1360 = vmatprep.mubr.bf16.mxu0 %v1193_v60  ;;  %v1220_v46 = vor.u32 %v1218_v29, %v1208_v22  ;;  %v2968_v9 = vld [vmem:[#allocation8 + $0x1c8] sm:$0xff]   ;;  %v2974_v14 = vld [vmem:[#allocation8 + $0x1f8] sm:$0xff]  }
 0x1d5   : > { %2595 = vmatprep.mubr.msk.bf16.mxu1 %vm3298_vm2, %v3297_v55  ;;  %v3728_v32 = vpack.c.bf16 %v733_v25, %v730_v13  ;;  %v3733_v43 = vpack.c.bf16 %v735_v33, %v732_v31  ;;  %v2972_v13 = vld [vmem:[#allocation8 + $0x1e8] sm:$0xff]   ;;  %v2985_v23 = vld [vmem:[#allocation11 + $0x10] sm:$0xff]   ;;  %v2990_v28 = vld [vmem:[#allocation11 + $0x38] sm:$0xff]  }
 0x1d6   : > { %2496 = vmatpush3.bf16.msra.mxu0 %v2959_v18  ;;  %2590 = vmatpush3.bf16.msra.mxu1 %v2960_v19  ;;  %v751_v35 = vpack.c.bf16 %v734_v1, %v731_v20  ;;  %v622_v36 = vpop.f32.mrb[16].mxu0  ;;  %v701_v37 = vpop.f32.mrb[16].mxu1  ;;  %v2978_v18 = vld [vmem:[#allocation8 + $0x218] sm:$0xff]   ;;  %v2980_v19 = vld [vmem:[#allocation8 + $0x228] sm:$0xff]  }
 0x1d7   : > { %2497 = vmatprep.subr.bf16.mxu0 %v2961_v24  ;;  %2591 = vmatprep.subr.bf16.mxu1 %v3297_v55  ;;  %v623_v39 = vadd.f32 %v622_v36, %v3644_v63  ;;  %v624_v40 = vpop.f32.mrb[17].mxu0  ;;  %v1214_v42 = vshll.u32 %v3728_v32, 16  ;;  %v702_v44 = vpop.f32.mrb[17].mxu1  ;;  %v1661_v60 = vshrl.u32 %v3728_v32, 16  ;;  %v2982_v20 = vld [vmem:[#allocation8 + $0x238] sm:$0xff]   ;;  %v2983_v21 = vld [vmem:[#allocation11] sm:$0xff]  }
 0x1d8   : > { %v1222_v45 = vshll.u32 %v751_v35, 16  ;;  %v625_v47 = vpop.f32.mrb[18].mxu0  ;;  %v703_v49 = vpop.f32.mrb[18].mxu1  ;;  %v2984_v22 = vld [vmem:[#allocation11 + $0x8] sm:$0xff]   ;;  %v2986_v24 = vld [vmem:[#allocation11 + $0x18] sm:$0xff]   ;;  %v2987_v25 = vld [vmem:[#allocation11 + $0x20] sm:$0xff]  }
 0x1d9   : > { %v736_v50 = vmax.f32 %v623_v39, 0.0  ;;  %v626_v52 = vadd.f32 %v625_v47, %v3644_v63  ;;  %v1216_v53 = vrot.slane %v1214_v42, 1  ;;  %v627_v54 = vpop.f32.mrb[19].mxu0  ;;  %v704_v56 = vpop.f32.mrb[19].mxu1  ;;  %v2989_v27 = vld [vmem:[#allocation11 + $0x30] sm:$0xff]  }
 0x1da   : > { %2498 = vmatpush3.bf16.msra.mxu0 %v2962_v0  ;;  %2592 = vmatpush3.bf16.msra.mxu1 %v2963_v34  ;;  %v1224_v59 = vrot.slane %v1222_v45, 1 }
 0x1db   : > { %2499 = vmatprep.subr.bf16.mxu0 %v2964_v38  ;;  %2593 = vmatprep.subr.bf16.mxu1 %v3297_v55  ;;  %v737_v61 = vmax.f32 %v626_v52, 0.0  ;;  %v3739_v62 = vsel %vm1169_vm1, %v1212_v41, %v1216_v53  ;;  %v1663_v7 = vor.u32 %v1661_v60, %v1216_v53 }
 0x1dc   : > { %v1225_v3 = vsel %vm1169_vm1, %v1220_v46, %v1224_v59 }
 0x1dd   : > { %v753_v63 = vpack.c.bf16 %v737_v61, %v736_v50 }
 0x1de   : > { %2500 = vmatpush3.bf16.msra.mxu0 %v2965_v57  ;;  %2594 = vmatpush3.bf16.msra.mxu1 %v2966_v58 }
 0x1df   : > { %2607 = vmatprep.subr.bf16.mxu1 %v3297_v55  ;;  %v1665_v5 = vshll.u32 %v753_v63, 16  ;;  %2663 = vmatprep.subr.bf16.mxu0 %v3297_v55 }
 0x1e1   : > { %1361 = vmatmul.mubr.bf16.vlgmr.msra.gmra.mrb[32].mxu0 %v3700_v2  ;;  %2596 = vmatmul.mubr.bf16.vlgmr.msra.gmra.mrb[32].mxu1 %v3674_v6  ;;  %v1667_v8 = vrot.slane %v1665_v5, 1  ;;  %v2970_v6 = vld [vmem:[#allocation8 + $0x1d8] sm:$0xff]   ;;  %v2971_v2 = vld [vmem:[#allocation8 + $0x1e0] sm:$0xff]  }
 0x1e2   : > { %2608 = vmatpush3.bf16.msra.mxu1 %v2967_v4  ;;  %1368 = vmatprep.mubr.bf16.mxu0 %v1209_v30 }
 0x1e3   : > { %2609 = vmatprep.subr.bf16.mxu1 %v3297_v55  ;;  %2599 = vmatprep.mubr.msk.bf16.mxu1 %vm3298_vm2, %v3297_v55  ;;  %v1668_v11 = vsel %vm1169_vm1, %v1663_v7, %v1667_v8 }
 0x1e4   : > { %2664 = vmatpush3.bf16.msra.mxu0 %v2983_v21 }
 0x1e5   : > { %2665 = vmatprep.subr.bf16.mxu0 %v3297_v55 }
 0x1e6   : > { %2610 = vmatpush3.bf16.msra.mxu1 %v2968_v9 }
 0x1e7   : > { %2611 = vmatprep.subr.bf16.mxu1 %v3297_v55 }
 0x1e8   : > { %2666 = vmatpush3.bf16.msra.mxu0 %v2984_v22 }
 0x1e9   : > { %1369 = vmatmul.mubr.bf16.gmra.mrb[36].mxu0 %v3719_v26  ;;  %2600 = vmatmul.mubr.bf16.gmra.mrb[36].mxu1 %v3697_v48  ;;  %v2973_v48 = vld [vmem:[#allocation8 + $0x1f0] sm:$0xff]  }
 0x1ea   : > { %2612 = vmatpush3.bf16.msra.mxu1 %v2969_v12  ;;  %1376 = vmatprep.mubr.bf16.mxu0 %v1225_v3  ;;  %v2313_v12 = vld [vmem:[#allocation10] ss:$0 sm:$0xff] }
 0x1eb   : > { %2613 = vmatprep.subr.bf16.mxu1 %v3297_v55  ;;  %2603 = vmatprep.mubr.msk.bf16.mxu1 %vm3298_vm2, %v3297_v55 }
 0x1ec   : > { %2667 = vmatprep.subr.bf16.mxu0 %v3297_v55 }
 0x1ed   : > { %2668 = vmatpush3.bf16.msra.mxu0 %v2985_v23 }
 0x1ee   : > { %2614 = vmatpush3.bf16.msra.mxu1 %v2970_v6  ;;  %2669 = vmatprep.subr.bf16.mxu0 %v3297_v55 }
 0x1ef   : > { %2615 = vmatprep.subr.bf16.mxu1 %v3297_v55 }
 0x1f1   : > { %1377 = vmatmul.mubr.bf16.gmra.mrb[40].mxu0 %v3739_v62  ;;  %2604 = vmatmul.mubr.bf16.gmra.mrb[40].mxu1 %v3728_v32 }
 0x1f2   : > { %2616 = vmatpush3.bf16.msra.mxu1 %v2971_v2  ;;  %2623 = vmatprep.mubr.msk.bf16.mxu1 %vm3298_vm2, %v3297_v55 }
 0x1f3   : > { %2617 = vmatprep.subr.bf16.mxu1 %v3297_v55  ;;  %2679 = vmatprep.mubr.msk.bf16.mxu0 %vm3298_vm2, %v3297_v55 }
 0x1f4   : > { %2670 = vmatpush3.bf16.msra.mxu0 %v2986_v24 }
 0x1f5   : > { %2671 = vmatprep.subr.bf16.mxu0 %v3297_v55 }
 0x1f6   : > { %2618 = vmatpush3.bf16.msra.mxu1 %v2972_v13 }
 0x1f7   : > { %2619 = vmatprep.subr.bf16.mxu1 %v3297_v55 }
 0x1f8   : > { %2672 = vmatpush3.bf16.msra.mxu0 %v2987_v25 }
 0x1f9   : > { %2673 = vmatprep.subr.bf16.mxu0 %v3297_v55 }
 0x1fa   : > { %2620 = vmatpush3.bf16.msra.mxu1 %v2973_v48 }
 0x1fb   : > { %2621 = vmatprep.subr.bf16.mxu1 %v3297_v55 }
 0x1fe   : > { %2622 = vmatpush3.bf16.msra.mxu1 %v2974_v14 }
 0x1ff   : > { %2635 = vmatprep.subr.bf16.mxu1 %v3297_v55 }
 0x201   : > { %2624 = vmatmul.mubr.bf16.vlgmr.msra.gmra.mrb[32].mxu1 %v3676_v10  ;;  %v2979_v10 = vld [vmem:[#allocation8 + $0x220] sm:$0xff]  }
 0x202   : > { %2636 = vmatpush3.bf16.msra.mxu1 %v2975_v15  ;;  %2627 = vmatprep.mubr.msk.bf16.mxu1 %vm3298_vm2, %v3297_v55 }
 0x203   : > { %2637 = vmatprep.subr.bf16.mxu1 %v3297_v55 }
 0x206   : > { %2638 = vmatpush3.bf16.msra.mxu1 %v2976_v16 }
 0x207   : > { %2639 = vmatprep.subr.bf16.mxu1 %v3297_v55 }
 0x209   : > { %2628 = vmatmul.mubr.bf16.gmra.mrb[36].mxu1 %v3702_v51  ;;  %v2981_v51 = vld [vmem:[#allocation8 + $0x230] sm:$0xff]  }
 0x20a   : > { %2640 = vmatpush3.bf16.msra.mxu1 %v2977_v17  ;;  %2631 = vmatprep.mubr.msk.bf16.mxu1 %vm3298_vm2, %v3297_v55 }
 0x20b   : > { %2641 = vmatprep.subr.bf16.mxu1 %v3297_v55 }
 0x20e   : > { %2642 = vmatpush3.bf16.msra.mxu1 %v2978_v18 }
 0x20f   : > { %2643 = vmatprep.subr.bf16.mxu1 %v3297_v55 }
 0x211   : > { %2632 = vmatmul.mubr.bf16.gmra.mrb[40].mxu1 %v3733_v43 }
 0x212   : > { %2644 = vmatpush3.bf16.msra.mxu1 %v2979_v10  ;;  %2651 = vmatprep.mubr.msk.bf16.mxu1 %vm3298_vm2, %v3297_v55 }
 0x213   : > { %2645 = vmatprep.subr.bf16.mxu1 %v3297_v55 }
 0x216   : > { %2646 = vmatpush3.bf16.msra.mxu1 %v2980_v19 }
 0x217   : > { %2647 = vmatprep.subr.bf16.mxu1 %v3297_v55 }
 0x21a   : > { %2648 = vmatpush3.bf16.msra.mxu1 %v2981_v51 }
 0x21b   : > { %2649 = vmatprep.subr.bf16.mxu1 %v3297_v55 }
 0x21e   : > { %2650 = vmatpush3.bf16.msra.mxu1 %v2982_v20 }
 0x221   : > { %2652 = vmatmul.mubr.bf16.vlgmr.msra.gmra.mrb[32].mxu1 %v3719_v26  ;;  %v2988_v26 = vld [vmem:[#allocation11 + $0x28] sm:$0xff]  }
 0x222   : > { %2655 = vmatprep.mubr.msk.bf16.mxu1 %vm3298_vm2, %v3297_v55  ;;  %2674 = vmatpush3.bf16.msra.mxu0 %v2988_v26 }
 0x223   : > { %2675 = vmatprep.subr.bf16.mxu0 %v3297_v55 }
 0x226   : > { %2676 = vmatpush3.bf16.msra.mxu0 %v2989_v27 }
 0x227   : > { %2677 = vmatprep.subr.bf16.mxu0 %v3297_v55 }
 0x229   : > { %2656 = vmatmul.mubr.bf16.gmra.mrb[36].mxu1 %v3739_v62 }
 0x22a   : > { %2659 = vmatprep.mubr.msk.bf16.mxu1 %vm3298_vm2, %v3297_v55  ;;  %2678 = vmatpush3.bf16.msra.mxu0 %v2990_v28 }
 0x22b   : > { %2683 = vmatprep.subr.bf16.mxu0 %v3297_v55 }
 0x231   : > { %2660 = vmatmul.mubr.bf16.gmra.mrb[40].mxu1 %v1668_v11 }
 0x294   : > { %v2433_v29 = vpop.f32.mrb[20].mxu0  ;;  %v2467_v1 = vpop.f32.mrb[20].mxu1 }
 0x295   : > { %v2434_v30 = vpop.f32.mrb[21].mxu0  ;;  %v2468_v31 = vpop.f32.mrb[21].mxu1 }
 0x296   : > { %v2435_v32 = vadd.f32 %v2434_v30, %v2433_v29  ;;  %v2469_v33 = vadd.f32 %v2468_v31, %v2467_v1  ;;  %v2436_v0 = vpop.f32.mrb[22].mxu0  ;;  %v2470_v34 = vpop.f32.mrb[22].mxu1 }
 0x297   : > { %v2437_v35 = vpop.f32.mrb[23].mxu0  ;;  %v2471_v36 = vpop.f32.mrb[23].mxu1 }
 0x298   : > { %v1109_v37 = vadd.f32 %v2469_v33, %v2435_v32  ;;  %v2438_v38 = vadd.f32 %v2437_v35, %v2436_v0  ;;  %v2472_v39 = vadd.f32 %v2471_v36, %v2470_v34 }
 0x29a   : > { %v1112_v40 = vadd.f32 %v2472_v39, %v2438_v38  ;;  %v1131_v17 = vadd.f32 %v2313_v12, %v1109_v37 }
 0x29c   : > { %v2439_v41 = vpop.f32.mrb[24].mxu0  ;;  %v1132_v51 = vadd.f32 %v2313_v12, %v1112_v40 }
 0x29d   : > { %v2440_v43 = vpop.f32.mrb[25].mxu0 }
 0x29e   : > { %v2473_v42 = vpop.f32.mrb[24].mxu1  ;;  %v2441_v45 = vadd.f32 %v2440_v43, %v2439_v41  ;;  %v2442_v47 = vpop.f32.mrb[26].mxu0 }
 0x29f   : > { %v2474_v44 = vpop.f32.mrb[25].mxu1  ;;  %v2443_v50 = vpop.f32.mrb[27].mxu0 }
 0x2a0   : > { %v2475_v46 = vadd.f32 %v2474_v44, %v2473_v42  ;;  %v2476_v49 = vpop.f32.mrb[26].mxu1  ;;  %v2444_v54 = vadd.f32 %v2443_v50, %v2442_v47 }
 0x2a1   : > { %v2477_v52 = vpop.f32.mrb[27].mxu1 }
 0x2a2   : > { %v1117_v53 = vadd.f32 %v2475_v46, %v2441_v45  ;;  %v2478_v56 = vadd.f32 %v2477_v52, %v2476_v49  ;;  %v2991_v45 = vld [vmem:[#allocation11 + $0x40] sm:$0xff]  }
 0x2a4   : > { %v1120_v57 = vadd.f32 %v2478_v56, %v2444_v54  ;;  %v2445_v58 = vpop.f32.mrb[28].mxu0  ;;  %v1133_v25 = vadd.f32 %v2313_v12, %v1117_v53  ;;  %v2992_v53 = vld [vmem:[#allocation11 + $0x48] sm:$0xff]  }
 0x2a5   : > { %v2446_v60 = vpop.f32.mrb[29].mxu0 }
 0x2a6   : > { %v2479_v59 = vpop.f32.mrb[28].mxu1  ;;  %v2447_v62 = vadd.f32 %v2446_v60, %v2445_v58  ;;  %v2448_v63 = vpop.f32.mrb[30].mxu0  ;;  %v1134_v29 = vadd.f32 %v2313_v12, %v1120_v57 }
 0x2a7   : > { %v2480_v61 = vpop.f32.mrb[29].mxu1  ;;  %v2449_v5 = vpop.f32.mrb[31].mxu0 }
 0x2a8   : > { %v2481_v3 = vadd.f32 %v2480_v61, %v2479_v59  ;;  %v2482_v4 = vpop.f32.mrb[30].mxu1  ;;  %v2450_v9 = vadd.f32 %v2449_v5, %v2448_v63  ;;  %v2993_v59 = vld [vmem:[#allocation11 + $0x50] sm:$0xff]  }
 0x2a9   : > { %v2483_v7 = vpop.f32.mrb[31].mxu1 }
 0x2aa   : > { %v1125_v8 = vadd.f32 %v2481_v3, %v2447_v62  ;;  %v2484_v11 = vadd.f32 %v2483_v7, %v2482_v4  ;;  %v2994_v4 = vld [vmem:[#allocation11 + $0x58] sm:$0xff]  }
 0x2ac   : > { %v1128_v6 = vadd.f32 %v2484_v11, %v2450_v9  ;;  %v1135_v2 = vadd.f32 %v2313_v12, %v1125_v8  ;;  %v2995_v11 = vld [vmem:[#allocation11 + $0x60] sm:$0xff]  }
 0x2ae   : > { %v1136_v13 = vadd.f32 %v2313_v12, %v1128_v6  ;;  %v2996_v6 = vld [vmem:[#allocation11 + $0x68] sm:$0xff]  }
 0x2b4   : > { %v2501_v48 = vpop.f32.mrb[32].mxu0 }
 0x2b5   : > { %v2502_v14 = vpop.f32.mrb[33].mxu0 }
 0x2b6   : > { %v2503_v15 = vadd.f32 %v2502_v14, %v2501_v48  ;;  %v2504_v16 = vpop.f32.mrb[34].mxu0  ;;  %v2999_v48 = vld [vmem:[#allocation11 + $0x80] sm:$0xff]   ;;  %v3000_v14 = vld [vmem:[#allocation11 + $0x88] sm:$0xff]  }
 0x2b7   : > { %v2505_v18 = vpop.f32.mrb[35].mxu0 }
 0x2b8   : > { %v2506_v10 = vadd.f32 %v2505_v18, %v2504_v16  ;;  %v1385_v19 = vadd.f32 %v2503_v15, %v1131_v17  ;;  %v3001_v15 = vld [vmem:[#allocation11 + $0x90] sm:$0xff]   ;;  %v3002_v16 = vld [vmem:[#allocation11 + $0x98] sm:$0xff]   ;;  %v3003_v17 = vld [vmem:[#allocation11 + $0xa0] sm:$0xff]  }
 0x2b9   : > { %v3004_v18 = vld [vmem:[#allocation11 + $0xa8] sm:$0xff]  }
 0x2ba   : > { %v1386_v20 = vadd.f32 %v2506_v10, %v1132_v51  ;;  %v3005_v10 = vld [vmem:[#allocation11 + $0xb0] sm:$0xff]   ;;  %v2386_v51 = vld [vmem:[#allocation13] ss:$0 sm:$0xff] }
 0x2bc   : > { %v2507_v21 = vpop.f32.mrb[36].mxu0 }
 0x2bd   : > { %v2508_v22 = vpop.f32.mrb[37].mxu0 }
 0x2be   : > { %v2509_v23 = vadd.f32 %v2508_v22, %v2507_v21  ;;  %v2510_v24 = vpop.f32.mrb[38].mxu0 }
 0x2bf   : > { %v2511_v26 = vpop.f32.mrb[39].mxu0 }
 0x2c0   : > { %v2512_v27 = vadd.f32 %v2511_v26, %v2510_v24  ;;  %v1387_v28 = vadd.f32 %v2509_v23, %v1133_v25 }
 0x2c2   : > { %v1388_v1 = vadd.f32 %v2512_v27, %v1134_v29 }
 0x2c4   : > { %v2513_v30 = vpop.f32.mrb[40].mxu0 }
 0x2c5   : > { %v2514_v31 = vpop.f32.mrb[41].mxu0 }
 0x2c6   : > { %v2515_v32 = vadd.f32 %v2514_v31, %v2513_v30  ;;  %v2516_v33 = vpop.f32.mrb[42].mxu0 }
 0x2c7   : > { %v2517_v0 = vpop.f32.mrb[43].mxu0 }
 0x2c8   : > { %v2518_v34 = vadd.f32 %v2517_v0, %v2516_v33  ;;  %v1389_v35 = vadd.f32 %v2515_v32, %v1135_v2  ;;  %v2997_v2 = vld [vmem:[#allocation11 + $0x70] sm:$0xff]  }
 0x2ca   : > { %v1390_v36 = vadd.f32 %v2518_v34, %v1136_v13  ;;  %v2998_v13 = vld [vmem:[#allocation11 + $0x78] sm:$0xff]  }
 0x2f4   : > { %v1752_v37 = vpop.f32.mrb[32].mxu1 }
 0x2f5   : > { %v2723_v38 = vadd.f32 %v1752_v37, %v1385_v19  ;;  %v2653_v39 = vpop.f32.mrb[33].mxu1  ;;  %v3006_v19 = vld [vmem:[#allocation11 + $0xb8] sm:$0xff]  }
 0x2f6   : > { %v1755_v40 = vpop.f32.mrb[34].mxu1 }
 0x2f7   : > { %v2724_v41 = vadd.f32 %v1755_v40, %v1386_v20  ;;  %v2654_v42 = vpop.f32.mrb[35].mxu1  ;;  %v1781_v43 = vmax.f32 %v2723_v38, 0.0 }
 0x2f9   : > { %v1782_v44 = vmax.f32 %v2724_v41, 0.0 }
 0x2fb   : > { %v1787_v46 = vpack.c.bf16 %v1782_v44, %v1781_v43 }
 0x2fc   : > { %v1760_v47 = vpop.f32.mrb[36].mxu1 }
 0x2fd   : > { %v2725_v49 = vadd.f32 %v1760_v47, %v1387_v28  ;;  %v2657_v50 = vpop.f32.mrb[37].mxu1  ;;  %2680 = vmatmul.mubr.bf16.vlgmr.msra.gmra.mrb[44].mxu0 %v1787_v46 }
 0x2fe   : > { %2684 = vmatpush3.bf16.msra.mxu0 %v2991_v45  ;;  %v1763_v52 = vpop.f32.mrb[38].mxu1  ;;  %2699 = vmatprep.mubr.msk.bf16.mxu0 %vm3298_vm2, %v3297_v55 }
 0x2ff   : > { %v2726_v54 = vadd.f32 %v1763_v52, %v1388_v1  ;;  %v2658_v56 = vpop.f32.mrb[39].mxu1  ;;  %2685 = vmatprep.subr.bf16.mxu0 %v3297_v55  ;;  %v1783_v57 = vmax.f32 %v2725_v49, 0.0 }
 0x301   : > { %v1784_v58 = vmax.f32 %v2726_v54, 0.0 }
 0x302   : > { %2686 = vmatpush3.bf16.msra.mxu0 %v2992_v53 }
 0x303   : > { %v1788_v60 = vpack.c.bf16 %v1784_v58, %v1783_v57  ;;  %2687 = vmatprep.subr.bf16.mxu0 %v3297_v55 }
 0x304   : > { %v1768_v61 = vpop.f32.mrb[40].mxu1 }
 0x305   : > { %v2727_v62 = vadd.f32 %v1768_v61, %v1389_v35  ;;  %v2661_v3 = vpop.f32.mrb[41].mxu1 }
 0x306   : > { %2688 = vmatpush3.bf16.msra.mxu0 %v2993_v59  ;;  %v1771_v63 = vpop.f32.mrb[42].mxu1 }
 0x307   : > { %v2728_v5 = vadd.f32 %v1771_v63, %v1390_v36  ;;  %v2662_v7 = vpop.f32.mrb[43].mxu1  ;;  %2689 = vmatprep.subr.bf16.mxu0 %v3297_v55  ;;  %v1785_v8 = vmax.f32 %v2727_v62, 0.0 }
 0x309   : > { %v1786_v9 = vmax.f32 %v2728_v5, 0.0 }
 0x30a   : > { %2690 = vmatpush3.bf16.msra.mxu0 %v2994_v4 }
 0x30b   : > { %v1789_v12 = vpack.c.bf16 %v1786_v9, %v1785_v8  ;;  %2691 = vmatprep.subr.bf16.mxu0 %v3297_v55 }
 0x30e   : > { %2692 = vmatpush3.bf16.msra.mxu0 %v2995_v11 }
 0x30f   : > { %2693 = vmatprep.subr.bf16.mxu0 %v3297_v55 }
 0x312   : > { %2694 = vmatpush3.bf16.msra.mxu0 %v2996_v6 }
 0x313   : > { %2695 = vmatprep.subr.bf16.mxu0 %v3297_v55 }
 0x316   : > { %2696 = vmatpush3.bf16.msra.mxu0 %v2997_v2 }
 0x317   : > { %2697 = vmatprep.subr.bf16.mxu0 %v3297_v55 }
 0x31a   : > { %2698 = vmatpush3.bf16.msra.mxu0 %v2998_v13 }
 0x31b   : > { %2703 = vmatprep.subr.bf16.mxu0 %v3297_v55 }
 0x31d   : > { %2700 = vmatmul.mubr.bf16.vlgmr.msra.gmra.mrb[44].mxu0 %v1788_v60 }
 0x31e   : > { %2704 = vmatpush3.bf16.msra.mxu0 %v2999_v48  ;;  %2719 = vmatprep.mubr.msk.bf16.mxu0 %vm3298_vm2, %v3297_v55 }
 0x31f   : > { %2705 = vmatprep.subr.bf16.mxu0 %v3297_v55 }
 0x322   : > { %2706 = vmatpush3.bf16.msra.mxu0 %v3000_v14 }
 0x323   : > { %2707 = vmatprep.subr.bf16.mxu0 %v3297_v55 }
 0x326   : > { %2708 = vmatpush3.bf16.msra.mxu0 %v3001_v15 }
 0x327   : > { %2709 = vmatprep.subr.bf16.mxu0 %v3297_v55 }
 0x32a   : > { %2710 = vmatpush3.bf16.msra.mxu0 %v3002_v16 }
 0x32b   : > { %2711 = vmatprep.subr.bf16.mxu0 %v3297_v55 }
 0x32e   : > { %2712 = vmatpush3.bf16.msra.mxu0 %v3003_v17 }
 0x32f   : > { %2713 = vmatprep.subr.bf16.mxu0 %v3297_v55 }
 0x332   : > { %2714 = vmatpush3.bf16.msra.mxu0 %v3004_v18 }
 0x333   : > { %2715 = vmatprep.subr.bf16.mxu0 %v3297_v55 }
 0x336   : > { %2716 = vmatpush3.bf16.msra.mxu0 %v3005_v10 }
 0x337   : > { %2717 = vmatprep.subr.bf16.mxu0 %v3297_v55 }
 0x33a   : > { %2718 = vmatpush3.bf16.msra.mxu0 %v3006_v19 }
 0x33d   : > { %2720 = vmatmul.mubr.bf16.vlgmr.msra.gmra.mrb[44].mxu0 %v1789_v12 }
 0x410   : > { %v2109_v20 = vpop.f32.mrb[44].mxu0 }
 0x411   : > { %v2729_v21 = vadd.f32 %v2386_v51, %v2109_v20  ;;  %v2721_v22 = vpop.f32.mrb[45].mxu0 }
 0x412   : > { %v2112_v23 = vpop.f32.mrb[46].mxu0 }
 0x413   : > { %2118 = vst [vmem:[%s377_s17] sm:$0xff] %v2729_v21  ;;  %v2730_v55 = vadd.f32 %v2386_v51, %v2112_v23  ;;  %v2722_v24 = vpop.f32.mrb[47].mxu0 }
 0x415   : > { %2119 = vst [vmem:[%s377_s17 + $0x8] sm:$0xff] %v2730_v55 }
 0x416   : > { %3218 = shalt.err (!%p3215_p8)
}
 0x417   : > { %s3219_s9 = scalar_lea.hbm %s3823_s21, 256  ;;  %s3223_s8 = scalar_lea.hbm %s3874_s7, 512 }
 0x418   : > { %p3220_p7 = scmp.ne.s32.totalorder %s3823_s21, %s3219_s9  ;;  %p3224_p3 = scmp.lt.u32.totalorder %s3823_s21, %s3874_s7 }
 0x419   : > { %p3225_p6 = scmp.lt.u32.totalorder %s3223_s8, %s3219_s9  ;;  %p3227_p0 = scmp.lt.u32.totalorder %s3219_s9, %s3823_s21 }
 0x41a   : > { %p3221_p9 = pnand %p3220_p7, %p3899_p5 }
 0x41b   : > { %p3226_p2 = por %p3225_p6, %p3224_p3 }
 0x41c   : > { %p3222_p4 = pneg %p3221_p9 }
 0x41d   : > { %p3228_p10 = por %p3227_p0, %p3226_p2 }
 0x41f   : > { %p3229_p1 = pnand %p3228_p10, %p3222_p4 }
 0x421   : > { %3232 = shalt.err (!%p3229_p1)
}
 0x422   : > { %s3300_s28 = smov 128   ;;  %s3301_s15 = smov 8  }
 0x423   : > { %2792 = dma.vmem_to_hbm [thread:$0]  (%p3899_p5), %s3818_s14, 256, %s3823_s21, %s2121_s19, %s3300_s28, %s3300_s28, %s3301_s15  }
 0x424 PF: > { %s2149_s30 = sand.u32 1, %s3271_s24   ;;  %p3900_p11 = scmp.ne.s32.totalorder %s3888_s20, 0 }
 0x425   : > { %p3901_p12 = scmp.ge.s32.totalorder %s3283_s27, 2  ;;  %s2150_s1 = scalar_lea.sflag [#allocation4], %s2149_s30 }
 0x427   : > { %p2818_p13 = pnand %p3901_p12, %p3900_p11 }
 0x429   : > { %3266 = dma.done.wait (!%p2818_p13), %s2150_s1, 256  }
 0x42a   : > { %3268 = vsyncadd (!%p2818_p13), %s2150_s1, 4294967040  ;;  %p23_p8 = scmp.ge.s32.totalorder %s3520_s11, 4   ;;  %s3902_s24 = smov %s3275_s25 }
 0x42b   : > { %s3903_s25 = smov %s3279_s26  ;;  %s3904_s26 = smov %s3531_s16 }
 0x42c   : > { %s3905_s27 = smov %s3520_s11  ;;  %25 = sbr.rel (!%p23_p8) target bundleno = 10 (0xa), region = 117 }
 0x433   :  { %2155 = vsyncpa [#allocation3], 1 }
 0x434   :  { %2157 = vsyncpa [#allocation3 + $0x1], 1 }
 0x435   :  { %2158 = vsyncpa [#allocation6], 1 }
 0x436   :  { %2159 = vsyncpa [#allocation9], 1 }
 0x437   :  { %2160 = vsyncpa [#allocation12], 1 }
 0x438   :  { %2161 = vsyncpa [#allocation4], 1 }
 0x439   :  { %2163 = vsyncpa [#allocation4 + $0x1], 1 }

</bundles_post_ra>
